<compile_context>
chip_gen: v5e
topology: v5e:2x2
jax: 0.10.0
libtpu: 0.0.40
codegen_flags: <defaults>
</compile_context>

<pallas_src>
import numpy as np
import jax
import jax.numpy as jnp
from jax import lax
from jax.experimental import pallas as pl
from jax.experimental.pallas import tpu as pltpu


# ---------------------------------------------------------------------------
# Kernel: global-avg-pool -> fc1 + relu -> fc2 + sigmoid -> x * scale
# ---------------------------------------------------------------------------
def _channel_attention_kernel(x_ref, fc1w_ref, fc1b_ref, fc2w_ref, fc2b_ref,
                              out_ref):
    # x_ref: (Bb, C, HW) f32 -- channels on sublanes, spatial on lanes.
    x = x_ref[...]

    # Global average pool over the full spatial extent (== F.avg_pool2d(x, H)).
    avg = jnp.mean(x, axis=-1)                                     # (Bb, C)

    # fc1 (1x1 conv) + ReLU  -- MXU matmul on the pooled vectors.
    h = jnp.dot(avg, fc1w_ref[...],
                preferred_element_type=jnp.float32) + fc1b_ref[...]
    h = jnp.maximum(h, 0.0)                                        # (Bb, Cr)

    # fc2 (1x1 conv) + sigmoid.
    s = jnp.dot(h, fc2w_ref[...],
                preferred_element_type=jnp.float32) + fc2b_ref[...]
    s = jax.nn.sigmoid(s)                                          # (Bb, C)

    # Broadcast the per-channel scale along the lane (spatial) axis; the store
    # is a full-width, lane-dense write.
    out_ref[...] = x * s[:, :, None]


# ---------------------------------------------------------------------------
# Host-side helpers
# ---------------------------------------------------------------------------
def _pick_block_b(batch):
    # Prefer >= 2 grid steps so the "parallel" batch axis can feed both
    # TensorCores (megacore / v7x); otherwise one image per step.
    for bb in (8, 4, 2):
        if batch % bb == 0 and batch // bb >= 2:
            return bb
    return 1


def _vmem_limit_bytes():
    # Per-generation VMEM budget (v5e/v6e: 128 MiB, v7x: 64 MiB) instead of a
    # hard-coded constant; fall back to the compiler default if unavailable.
    try:
        info = pltpu.get_tpu_info()
        cap = getattr(info, "vmem_capacity_bytes", None)
        if cap:
            return int(cap * 3 // 4)
    except Exception:
        pass
    return None


def init_params(key, C, ratio=16):
    """Random parameters.  Mapping from the PyTorch module:
         fc1w = fc1.weight.reshape(C//ratio, C).T   -> (C,  C//ratio)
         fc1b = fc1.bias.reshape(1, C//ratio)
         fc2w = fc2.weight.reshape(C, C//ratio).T   -> (C//ratio, C)
         fc2b = fc2.bias.reshape(1, C)
    """
    Cr = C // ratio
    assert Cr >= 1, "in_planes must be >= ratio"
    k1, k2, k3, k4 = jax.random.split(key, 4)
    return dict(
        fc1w=0.1 * jax.random.normal(k1, (C, Cr), jnp.float32),
        fc1b=0.01 * jax.random.normal(k2, (1, Cr), jnp.float32),
        fc2w=0.1 * jax.random.normal(k3, (Cr, C), jnp.float32),
        fc2b=0.01 * jax.random.normal(k4, (1, C), jnp.float32),
    )


# ---------------------------------------------------------------------------
# Wrapper
# ---------------------------------------------------------------------------
def channel_attention_forward(x, params, *, block_b=None):
    """Fused ChannelAttention forward.  x: (B, C, H, W) float32 (NCHW)."""
    B, C, H, W = x.shape
    assert H == W, "spec pools with kernel_size = x.size(2); expects square maps"
    HW = H * W
    Cr = params["fc1w"].shape[1]

    if block_b is None:
        block_b = _pick_block_b(B)
    assert B % block_b == 0, (B, block_b)
    grid = (B // block_b,)

    # Pure view change: NCHW -> (B, C, H*W); channels -> sublanes, HW -> lanes.
    x3 = x.reshape(B, C, HW)

    def run(use_buffered):
        def const_spec(shape):
            # Weights never change across the batch grid: constant index map,
            # single-buffered to halve their VMEM footprint.
            imap = lambda b: (0,) * len(shape)
            if use_buffered:
                return pl.BlockSpec(shape, imap, pipeline_mode=pl.Buffered(1))
            return pl.BlockSpec(shape, imap)

        return pl.pallas_call(
            _channel_attention_kernel,
            out_shape=jax.ShapeDtypeStruct((B, C, HW), jnp.float32),
            grid=grid,
            in_specs=[
                pl.BlockSpec((block_b, C, HW), lambda b: (b, 0, 0)),   # x
                const_spec((C, Cr)),                                   # fc1 w
                const_spec((1, Cr)),                                   # fc1 b
                const_spec((Cr, C)),                                   # fc2 w
                const_spec((1, C)),                                    # fc2 b
            ],
            out_specs=pl.BlockSpec((block_b, C, HW), lambda b: (b, 0, 0)),
            compiler_params=pltpu.CompilerParams(
                dimension_semantics=("parallel",),
                vmem_limit_bytes=_vmem_limit_bytes()),
        )(x3, params["fc1w"], params["fc1b"], params["fc2w"], params["fc2b"])

    try:
        out = run(use_buffered=True)
    except Exception:
        # Fallback for jax versions without BlockSpec(pipeline_mode=...):
        # identical semantics, default double-buffering of the weights.
        out = run(use_buffered=False)

    return out.reshape(B, C, H, W)


# Pure-JAX reference mirroring the PyTorch module exactly.
def channel_attention_reference(x, p):
    avg = jnp.mean(x, axis=(2, 3))                                 # (B, C)
    h = jax.nn.relu(jnp.dot(avg, p["fc1w"],
                            precision=lax.Precision.HIGHEST) + p["fc1b"])
    s = jax.nn.sigmoid(jnp.dot(h, p["fc2w"],
                               precision=lax.Precision.HIGHEST) + p["fc2b"])
    return x * s[:, :, None, None]


if __name__ == "__main__":
    # Small shapes: C >= ratio (so fc1 has >= 1 output channel) and H*W a
    # multiple of 128 so the DMAs / stores are lane-dense.
    B, C, H, W = 2, 128, 16, 16
    key = jax.random.PRNGKey(0)
    kx, kp = jax.random.split(key)
    x = jax.random.normal(kx, (B, C, H, W), jnp.float32)
    params = init_params(kp, C, ratio=16)

    out = channel_attention_forward(x, params)
    out = jax.block_until_ready(out)
    assert out.shape == (B, C, H, W), out.shape

    ref = jax.block_until_ready(channel_attention_reference(x, params))
    np.testing.assert_allclose(np.asarray(out), np.asarray(ref),
                               rtol=1e-4, atol=1e-4)
    print("KERNEL_OK")
</pallas_src>

<mosaic_0001>
module attributes {stable_mosaic.version = 11 : i64} {
  func.func @_channel_attention_kernel(%arg0: i32, %arg1: memref<1x128x256xf32, #tpu.memory_space<vmem>>, %arg2: memref<128x8xf32, #tpu.memory_space<vmem>>, %arg3: memref<1x8xf32, #tpu.memory_space<vmem>>, %arg4: memref<8x128xf32, #tpu.memory_space<vmem>>, %arg5: memref<1x128xf32, #tpu.memory_space<vmem>>, %arg6: memref<1x128x256xf32, #tpu.memory_space<vmem>>) attributes {dimension_semantics = [#tpu.dimension_semantics<parallel>], iteration_bounds = array<i64: 2>, scalar_prefetch = 0 : i64, scratch_operands = 0 : i64, tpu.core_type = #tpu.core_type<tc>, window_params = [{transform_indices = @transform_0, window_bounds = array<i64: 1, 128, 256>}, {pipeline_mode = #tpu.pipeline_mode<synchronous>, transform_indices = @transform_1, window_bounds = array<i64: 128, 8>}, {pipeline_mode = #tpu.pipeline_mode<synchronous>, transform_indices = @transform_2, window_bounds = array<i64: 1, 8>}, {pipeline_mode = #tpu.pipeline_mode<synchronous>, transform_indices = @transform_3, window_bounds = array<i64: 8, 128>}, {pipeline_mode = #tpu.pipeline_mode<synchronous>, transform_indices = @transform_4, window_bounds = array<i64: 1, 128>}, {transform_indices = @transform_5, window_bounds = array<i64: 1, 128, 256>}]} {
    %c0 = arith.constant 0 : index
    %c0_0 = arith.constant 0 : index
    %c0_1 = arith.constant 0 : index
    %0 = vector.load %arg1[%c0, %c0_0, %c0_1] : memref<1x128x256xf32, #tpu.memory_space<vmem>>, vector<1x128x256xf32>
    %cst = arith.constant dense<0.000000e+00> : vector<1x128xf32>
    %1 = vector.multi_reduction <add>, %0, %cst [2] : vector<1x128x256xf32> to vector<1x128xf32>
    %cst_2 = arith.constant 2.560000e+02 : f32
    %2 = vector.broadcast %cst_2 : f32 to vector<1x128xf32>
    %3 = arith.divf %1, %2 : vector<1x128xf32>
    %c0_3 = arith.constant 0 : index
    %c0_4 = arith.constant 0 : index
    %4 = vector.load %arg2[%c0_3, %c0_4] : memref<128x8xf32, #tpu.memory_space<vmem>>, vector<128x8xf32>
    %cst_5 = arith.constant dense<0.000000e+00> : vector<1x8xf32>
    %5 = tpu.matmul %3, %4, %cst_5 {dimension_numbers = #tpu.dot_dimension_numbers<[1], [0], [0], [1], [0, 0, 1, 1], [], []>} : vector<1x128xf32>, vector<128x8xf32>, vector<1x8xf32> -> vector<1x8xf32>
    %c0_6 = arith.constant 0 : index
    %c0_7 = arith.constant 0 : index
    %6 = vector.load %arg3[%c0_6, %c0_7] : memref<1x8xf32, #tpu.memory_space<vmem>>, vector<1x8xf32>
    %7 = arith.addf %5, %6 : vector<1x8xf32>
    %cst_8 = arith.constant 0.000000e+00 : f32
    %8 = vector.broadcast %cst_8 : f32 to vector<1x8xf32>
    %9 = arith.maximumf %7, %8 : vector<1x8xf32>
    %c0_9 = arith.constant 0 : index
    %c0_10 = arith.constant 0 : index
    %10 = vector.load %arg4[%c0_9, %c0_10] : memref<8x128xf32, #tpu.memory_space<vmem>>, vector<8x128xf32>
    %cst_11 = arith.constant dense<0.000000e+00> : vector<1x128xf32>
    %11 = tpu.matmul %9, %10, %cst_11 {dimension_numbers = #tpu.dot_dimension_numbers<[1], [0], [0], [1], [0, 0, 1, 1], [], []>} : vector<1x8xf32>, vector<8x128xf32>, vector<1x128xf32> -> vector<1x128xf32>
    %c0_12 = arith.constant 0 : index
    %c0_13 = arith.constant 0 : index
    %12 = vector.load %arg5[%c0_12, %c0_13] : memref<1x128xf32, #tpu.memory_space<vmem>>, vector<1x128xf32>
    %13 = arith.addf %11, %12 : vector<1x128xf32>
    %14 = arith.negf %13 : vector<1x128xf32>
    %15 = math.exp %14 : vector<1x128xf32>
    %cst_14 = arith.constant 1.000000e+00 : f32
    %16 = vector.broadcast %cst_14 : f32 to vector<1x128xf32>
    %17 = arith.addf %16, %15 : vector<1x128xf32>
    %18 = arith.divf %16, %17 : vector<1x128xf32>
    %19 = vector.shape_cast %18 : vector<1x128xf32> to vector<1x128x1xf32>
    %20 = vector.broadcast %19 : vector<1x128x1xf32> to vector<1x128x256xf32>
    %21 = arith.mulf %0, %20 : vector<1x128x256xf32>
    %c0_15 = arith.constant 0 : index
    %c0_16 = arith.constant 0 : index
    %c0_17 = arith.constant 0 : index
    %22 = vector.load %arg6[%c0_15, %c0_16, %c0_17] : memref<1x128x256xf32, #tpu.memory_space<vmem>>, vector<1x128x256xf32>
    tpu.vector_store %arg6[%c0_15, %c0_16, %c0_17], %21 {strides = array<i32>} : memref<1x128x256xf32, #tpu.memory_space<vmem>>, vector<1x128x256xf32>,
    return
  }
  func.func @transform_0(%arg0: i32) -> (i32, i32, i32) {
    %c0_i32 = arith.constant 0 : i32
    %c0_i32_0 = arith.constant 0 : i32
    %c0_i32_1 = arith.constant 0 : i32
    return %arg0, %c0_i32, %c0_i32_0 : i32, i32, i32
  }
  func.func @transform_1(%arg0: i32) -> (i32, i32) {
    %c0_i32 = arith.constant 0 : i32
    %c0_i32_0 = arith.constant 0 : i32
    %c0_i32_1 = arith.constant 0 : i32
    return %c0_i32, %c0_i32_0 : i32, i32
  }
  func.func @transform_2(%arg0: i32) -> (i32, i32) {
    %c0_i32 = arith.constant 0 : i32
    %c0_i32_0 = arith.constant 0 : i32
    %c0_i32_1 = arith.constant 0 : i32
    return %c0_i32, %c0_i32_0 : i32, i32
  }
  func.func @transform_3(%arg0: i32) -> (i32, i32) {
    %c0_i32 = arith.constant 0 : i32
    %c0_i32_0 = arith.constant 0 : i32
    %c0_i32_1 = arith.constant 0 : i32
    return %c0_i32, %c0_i32_0 : i32, i32
  }
  func.func @transform_4(%arg0: i32) -> (i32, i32) {
    %c0_i32 = arith.constant 0 : i32
    %c0_i32_0 = arith.constant 0 : i32
    %c0_i32_1 = arith.constant 0 : i32
    return %c0_i32, %c0_i32_0 : i32, i32
  }
  func.func @transform_5(%arg0: i32) -> (i32, i32, i32) {
    %c0_i32 = arith.constant 0 : i32
    %c0_i32_0 = arith.constant 0 : i32
    %c0_i32_1 = arith.constant 0 : i32
    return %arg0, %c0_i32, %c0_i32_0 : i32, i32, i32
  }
}

module attributes {stable_mosaic.version = 11 : i64} {
  func.func @_channel_attention_kernel(%arg0: i32, %arg1: memref<1x128x256xf32, #tpu.memory_space<vmem>>, %arg2: memref<128x8xf32, #tpu.memory_space<vmem>>, %arg3: memref<1x8xf32, #tpu.memory_space<vmem>>, %arg4: memref<8x128xf32, #tpu.memory_space<vmem>>, %arg5: memref<1x128xf32, #tpu.memory_space<vmem>>, %arg6: memref<1x128x256xf32, #tpu.memory_space<vmem>>) attributes {dimension_semantics = [#tpu.dimension_semantics<parallel>], iteration_bounds = array<i64: 2>, scalar_prefetch = 0 : i64, scratch_operands = 0 : i64, tpu.core_type = #tpu.core_type<tc>, window_params = [{transform_indices = @transform_0, window_bounds = array<i64: 1, 128, 256>}, {pipeline_mode = #tpu.pipeline_mode<synchronous>, transform_indices = @transform_1, window_bounds = array<i64: 128, 8>}, {pipeline_mode = #tpu.pipeline_mode<synchronous>, transform_indices = @transform_2, window_bounds = array<i64: 1, 8>}, {pipeline_mode = #tpu.pipeline_mode<synchronous>, transform_indices = @transform_3, window_bounds = array<i64: 8, 128>}, {pipeline_mode = #tpu.pipeline_mode<synchronous>, transform_indices = @transform_4, window_bounds = array<i64: 1, 128>}, {transform_indices = @transform_5, window_bounds = array<i64: 1, 128, 256>}]} {
    %c0 = arith.constant 0 : index
    %c0_0 = arith.constant 0 : index
    %c0_1 = arith.constant 0 : index
    %0 = vector.load %arg1[%c0, %c0_0, %c0_1] : memref<1x128x256xf32, #tpu.memory_space<vmem>>, vector<1x128x256xf32>
    %cst = arith.constant dense<0.000000e+00> : vector<1x128xf32>
    %1 = vector.multi_reduction <add>, %0, %cst [2] : vector<1x128x256xf32> to vector<1x128xf32>
    %cst_2 = arith.constant 2.560000e+02 : f32
    %2 = vector.broadcast %cst_2 : f32 to vector<1x128xf32>
    %3 = arith.divf %1, %2 : vector<1x128xf32>
    %c0_3 = arith.constant 0 : index
    %c0_4 = arith.constant 0 : index
    %4 = vector.load %arg2[%c0_3, %c0_4] : memref<128x8xf32, #tpu.memory_space<vmem>>, vector<128x8xf32>
    %cst_5 = arith.constant dense<0.000000e+00> : vector<1x8xf32>
    %5 = tpu.matmul %3, %4, %cst_5 {dimension_numbers = #tpu.dot_dimension_numbers<[1], [0], [0], [1], [0, 0, 1, 1], [], []>} : vector<1x128xf32>, vector<128x8xf32>, vector<1x8xf32> -> vector<1x8xf32>
    %c0_6 = arith.constant 0 : index
    %c0_7 = arith.constant 0 : index
    %6 = vector.load %arg3[%c0_6, %c0_7] : memref<1x8xf32, #tpu.memory_space<vmem>>, vector<1x8xf32>
    %7 = arith.addf %5, %6 : vector<1x8xf32>
    %cst_8 = arith.constant 0.000000e+00 : f32
    %8 = vector.broadcast %cst_8 : f32 to vector<1x8xf32>
    %9 = arith.maximumf %7, %8 : vector<1x8xf32>
    %c0_9 = arith.constant 0 : index
    %c0_10 = arith.constant 0 : index
    %10 = vector.load %arg4[%c0_9, %c0_10] : memref<8x128xf32, #tpu.memory_space<vmem>>, vector<8x128xf32>
    %cst_11 = arith.constant dense<0.000000e+00> : vector<1x128xf32>
    %11 = tpu.matmul %9, %10, %cst_11 {dimension_numbers = #tpu.dot_dimension_numbers<[1], [0], [0], [1], [0, 0, 1, 1], [], []>} : vector<1x8xf32>, vector<8x128xf32>, vector<1x128xf32> -> vector<1x128xf32>
    %c0_12 = arith.constant 0 : index
    %c0_13 = arith.constant 0 : index
    %12 = vector.load %arg5[%c0_12, %c0_13] : memref<1x128xf32, #tpu.memory_space<vmem>>, vector<1x128xf32>
    %13 = arith.addf %11, %12 : vector<1x128xf32>
    %14 = arith.negf %13 : vector<1x128xf32>
    %15 = math.exp %14 : vector<1x128xf32>
    %cst_14 = arith.constant 1.000000e+00 : f32
    %16 = vector.broadcast %cst_14 : f32 to vector<1x128xf32>
    %17 = arith.addf %16, %15 : vector<1x128xf32>
    %18 = arith.divf %16, %17 : vector<1x128xf32>
    %19 = vector.shape_cast %18 : vector<1x128xf32> to vector<1x128x1xf32>
    %20 = vector.broadcast %19 : vector<1x128x1xf32> to vector<1x128x256xf32>
    %21 = arith.mulf %0, %20 : vector<1x128x256xf32>
    %c0_15 = arith.constant 0 : index
    %c0_16 = arith.constant 0 : index
    %c0_17 = arith.constant 0 : index
    %22 = vector.load %arg6[%c0_15, %c0_16, %c0_17] : memref<1x128x256xf32, #tpu.memory_space<vmem>>, vector<1x128x256xf32>
    tpu.vector_store %arg6[%c0_15, %c0_16, %c0_17], %21 {strides = array<i32>} : memref<1x128x256xf32, #tpu.memory_space<vmem>>, vector<1x128x256xf32>,
    return
  }
  func.func @transform_0(%arg0: i32) -> (i32, i32, i32) {
    %c0_i32 = arith.constant 0 : i32
    %c0_i32_0 = arith.constant 0 : i32
    %c0_i32_1 = arith.constant 0 : i32
    return %arg0, %c0_i32, %c0_i32_0 : i32, i32, i32
  }
  func.func @transform_1(%arg0: i32) -> (i32, i32) {
    %c0_i32 = arith.constant 0 : i32
    %c0_i32_0 = arith.constant 0 : i32
    %c0_i32_1 = arith.constant 0 : i32
    return %c0_i32, %c0_i32_0 : i32, i32
  }
  func.func @transform_2(%arg0: i32) -> (i32, i32) {
    %c0_i32 = arith.constant 0 : i32
    %c0_i32_0 = arith.constant 0 : i32
    %c0_i32_1 = arith.constant 0 : i32
    return %c0_i32, %c0_i32_0 : i32, i32
  }
  func.func @transform_3(%arg0: i32) -> (i32, i32) {
    %c0_i32 = arith.constant 0 : i32
    %c0_i32_0 = arith.constant 0 : i32
    %c0_i32_1 = arith.constant 0 : i32
    return %c0_i32, %c0_i32_0 : i32, i32
  }
  func.func @transform_4(%arg0: i32) -> (i32, i32) {
    %c0_i32 = arith.constant 0 : i32
    %c0_i32_0 = arith.constant 0 : i32
    %c0_i32_1 = arith.constant 0 : i32
    return %c0_i32, %c0_i32_0 : i32, i32
  }
  func.func @transform_5(%arg0: i32) -> (i32, i32, i32) {
    %c0_i32 = arith.constant 0 : i32
    %c0_i32_0 = arith.constant 0 : i32
    %c0_i32_1 = arith.constant 0 : i32
    return %arg0, %c0_i32, %c0_i32_0 : i32, i32, i32
  }
}

</mosaic_0001>

<bundles_post_ra>
// kernel: tpu_custom_call.1
= control target key start
LH: loop header
LB: loop body
LE: loop exit
PB: predicated region body
PF: predicated region fallthrough
CT: control target
= control target key end

     0   :  { %10 = vsyncpa [#allocation3], 0  ;;  %s1427_s0 = inlined_call_operand.hbm [shape: f32[2,128,256], index: 0, kind: input, shape index: {}]   ;;  %s1428_s1 = inlined_call_operand.vmem [shape: f32[128,8], index: 1, kind: input, shape index: {}]   ;;  %s1429_s2 = inlined_call_operand.vmem [shape: f32[1,8], index: 2, kind: input, shape index: {}]   ;;  %s1430_s3 = inlined_call_operand.vmem [shape: f32[8,128], index: 3, kind: input, shape index: {}]   ;;  %s1431_s4 = inlined_call_operand.vmem [shape: f32[1,128], index: 4, kind: input, shape index: {}]   ;;  %s1432_s5 = inlined_call_operand.hbm [shape: f32[2,128,256], index: 5, kind: output, shape index: {}]  }
   0x1   :  { %12 = vsyncpa [#allocation3 + $0x1], 0 }
   0x2   :  { %13 = vsyncpa [#allocation4], 0 }
   0x3   :  { %15 = vsyncpa [#allocation4 + $0x1], 0  ;;  %s986_s18 = smov 0   ;;  %s988_s19 = smov 0  }
   0x4   :  { %s990_s20 = smov 0   ;;  %s992_s21 = smov 0  }
   0x5 LB: > { %s1007_s22 = sadd.s32 4294967295, %s949_s21   ;;  %s761_s23 = sadd.s32 4294967294, %s949_s21   ;;  %s949_s21 = sphi %s992_s21, %s1442_s21   ;;  %s945_s20 = sphi %s990_s20, %s1441_s20   ;;  %s941_s19 = sphi %s988_s19, %s1440_s19   ;;  %s937_s18 = sphi %s986_s18, %s1439_s18  }
   0x6   : > { %s1011_s24 = sadd.s32 1, %s949_s21   ;;  %s28_s25 = sadd.s32 1, %s945_s20 }
   0x7   : > { %s25_s26 = ssub.s32 %s949_s21, %s1011_s24  ;;  %p35_p0 = scmp.ne.s32.totalorder %s945_s20, %s941_s19 }
   0x8   : > { %p26_p1 = scmp.eq.s32.totalorder %s25_s26, 0  ;;  %p36_p2 = scmp.eq.s32.totalorder %s949_s21, 0 }
   0x9   : > { %p41_p3 = scmp.ne.s32.totalorder %s941_s19, %s937_s18  ;;  %p42_p4 = scmp.eq.s32.totalorder %s1007_s22, 0 }
   0xa   : > { %s1023_s27 = scalar_select %p26_p1, %s945_s20, %s28_s25  }
   0xb   : > { %p1025_p5 = por %p36_p2, %p35_p0  ;;  %p1029_p6 = por %p42_p4, %p41_p3 }
   0xc   : > { %p149_p7 = scmp.eq.s32.totalorder %s1007_s22, 1  ;;  %p155_p8 = scmp.eq.s32.totalorder %s761_s23, 1 }
   0xd   : > { %p791_p10 = scmp.lt.s32.totalorder %s949_s21, 2  ;;  %s187_s7 = sand.u32 1, %s945_s20  }
   0xe   : > { %p1036_p11 = por %p149_p7, %p35_p0  ;;  %p1040_p12 = por %p155_p8, %p41_p3 }
   0xf   : > { %s777_s8 = sshll.u32 %s949_s21, 8  ;;  %s764_s9 = sshll.u32 %s187_s7, 8 }
  0x10   : > { %s196_s12 = scalar_lea.hbm %s1427_s0, %s777_s8  ;;  %s191_s14 = scalar_lea.vmem [#allocation2], %s764_s9 }
  0x11   : > { %s197_s13 = sshll.u32 %s196_s12, 4  ;;  %s199_s15 = sshll.u32 %s191_s14, 4  ;;  %s198_s13 = int_to_ptr.hbm [resolvable:$true] %s197_s13  ;;  %s200_s15 = int_to_ptr.vmem [resolvable:$true] %s199_s15 }
  0x12   : > { %p1051_p13 = pnand %p791_p10, %p1025_p5  ;;  %p767_p0 = scmp.ge.s32.totalorder %s949_s21, 1 }
  0x13   : > { %p207_p1 = scmp.lt.s32.totalorder %s949_s21, 3  ;;  %s188_s17 = scalar_lea.sflag [#allocation3], %s187_s7 }
  0x14   : > { %s853_s23 = sshra.s32 %s198_s13, 4  ;;  %p857_p3 = pneg %p1051_p13  ;;  %s854_s23 = int_to_ptr.hbm [resolvable:$true] %s853_s23 }
  0x15   : > { %s855_s25 = scalar_lea.hbm %s854_s23, 256  ;;  %s860_s28 = scalar_lea.hbm %s1427_s0, 512 }
  0x16   : > { %p856_p2 = scmp.ne.s32.totalorder %s854_s23, %s855_s25  ;;  %p861_p5 = scmp.lt.s32.totalorder %s854_s23, %s1427_s0 }
  0x17   : > { %p862_p8 = scmp.lt.s32.totalorder %s860_s28, %s855_s25 }
  0x18   : > { %p858_p4 = pnand %p857_p3, %p856_p2 }
  0x19   : > { %p863_p10 = por %p862_p8, %p861_p5 }
  0x1a   : > { %p859_p7 = pneg %p858_p4 }
  0x1c   : > { %p864_p9 = pnand %p863_p10, %p859_p7 }
  0x1e   : > { %867 = shalt.err (!%p864_p9)
}
  0x1f   : > { %s951_s7 = smov 256   ;;  %s952_s11 = smov 16  }
  0x20   : > { %786 = dma.hbm_to_vmem [thread:$0]  (!%p1051_p13), %s198_s13, 4096, %s200_s15, %s188_s17, %s951_s7, %s951_s7, %s952_s11  }
  0x21   : > { %p208_p2 = pnand %p767_p0, %p207_p1 }
  0x22   : > { %s1072_s12 = sand.u32 (!%p208_p2), 1, %s941_s19  }
  0x23   : > { %211 = sbr.rel (%p208_p2) target bundleno = 696 (0x2b8), region = 40  ;;  %s768_s14 = sshll.u32 (!%p208_p2), %s1072_s12, 8 }
  0x24   : > { %s214_s23 = scalar_lea.sflag (!%p208_p2), [#allocation3], %s1072_s12  ;;  %s1078_s25 = scalar_lea.vmem (!%p208_p2), [#allocation2], %s768_s14 }
  0x28   : > { %928 = dma.done.wait (%p1029_p6), %s214_s23, 4096  }
  0x29   : > { %930 = vsyncadd (%p1029_p6), %s214_s23, 4294963200  ;;  %v1085_v0 = vld [vmem:[%s1078_s25] sm:$0xff]  ;;  %v1088_v1 = vld [vmem:[%s1078_s25 + $0x8] sm:$0xff]  ;;  %v953_v48 = vmov 256.0   ;;  %vm386_vm1 = vcmask 130112   ;;  %vm390_vm2 = vcmask 195712  }
  0x2a   : > { %v1091_v2 = vld [vmem:[%s1078_s25 + $0x20] sm:$0xff]  ;;  %v277_v3 = vadd.f32 %v1088_v1, %v1085_v0  ;;  %v1096_v4 = vld [vmem:[%s1078_s25 + $0x28] sm:$0xff]  ;;  %v1109_v9 = vld [vmem:[%s1078_s25 + $0x10] sm:$0xff]  ;;  %847 = vrcp.f32 %v953_v48  ;;  %vm394_vm3 = vcmask 261312   ;;  %vm398_vm4 = vcmask 326912   ;;  %s1329_s7 = scalar_lea.vmem [#allocation5], %s768_s14 }
  0x2b   : > { %v1099_v5 = vld [vmem:[%s1078_s25 + $0x40] sm:$0xff]  ;;  %v1102_v6 = vld [vmem:[%s1078_s25 + $0x48] sm:$0xff]  ;;  %v283_v7 = vadd.f32 %v1096_v4, %v1091_v2  ;;  %v1112_v10 = vld [vmem:[%s1078_s25 + $0x18] sm:$0xff]  ;;  %vm402_vm5 = vcmask 392512   ;;  %vm406_vm6 = vcmask 458112   ;;  %vm410_vm7 = vcmask 523712  }
  0x2c   : > { %v289_v8 = vadd.f32 %v1102_v6, %v1099_v5  ;;  %278 = vadd.xlane.f32.xlu0 %v277_v3  ;;  %v1115_v11 = vld [vmem:[%s1078_s25 + $0x30] sm:$0xff]  ;;  %v1118_v12 = vld [vmem:[%s1078_s25 + $0x38] sm:$0xff]  ;;  %v280_v15 = vadd.f32 %v1112_v10, %v1109_v9  ;;  %v1133_v18 = vld [vmem:[%s1078_s25 + $0x60] sm:$0xff]  ;;  %vm414_vm8 = vcmask 589312   ;;  %vm418_vm9 = vcmask 654912   ;;  %s778_s14 = sshll.u32 %s1007_s22, 8 }
  0x2d   : > { %284 = vadd.xlane.f32.xlu1 %v283_v7  ;;  %v1121_v13 = vld [vmem:[%s1078_s25 + $0x50] sm:$0xff]  ;;  %v1124_v14 = vld [vmem:[%s1078_s25 + $0x58] sm:$0xff]  ;;  %v286_v16 = vadd.f32 %v1118_v12, %v1115_v11  ;;  %v1136_v19 = vld [vmem:[%s1078_s25 + $0x68] sm:$0xff]  ;;  %v381_v7 = vlaneseq  ;;  %vm422_vm10 = vcmask 720512   ;;  %vm426_vm11 = vcmask 786112   ;;  %s685_s29 = sshll.u32 %s1329_s7, 4  ;;  %s686_s29 = int_to_ptr.vmem [resolvable:$true] %s685_s29 }
  0x2e   : > { %290 = vadd.xlane.f32.xlu2 %v289_v8  ;;  %v292_v17 = vadd.f32 %v1124_v14, %v1121_v13  ;;  %v1139_v20 = vld [vmem:[%s1078_s25 + $0x70] sm:$0xff]  ;;  %v1142_v21 = vld [vmem:[%s1078_s25 + $0x78] sm:$0xff]  ;;  %v1145_v22 = vld [vmem:[%s1078_s25 + $0x80] sm:$0xff]  ;;  %v295_v24 = vadd.f32 %v1136_v19, %v1133_v18  ;;  %vm430_vm12 = vcmask 851712   ;;  %vm434_vm13 = vcmask 917312   ;;  %s673_s15 = scalar_lea.sflag [#allocation4], %s1072_s12 }
  0x2f   : > { %v1148_v23 = vld [vmem:[%s1078_s25 + $0x88] sm:$0xff]  ;;  %v298_v25 = vadd.f32 %v1142_v21, %v1139_v20  ;;  %v1157_v27 = vld [vmem:[%s1078_s25 + $0x90] sm:$0xff]  ;;  %v1160_v28 = vld [vmem:[%s1078_s25 + $0x98] sm:$0xff]  ;;  %vm438_vm14 = vcmask 982912   ;;  %vm442_vm15 = vcmask 1048512   ;;  %s903_s8 = scalar_lea.hbm %s1432_s5, 512 }
  0x30   : > { %v301_v26 = vadd.f32 %v1148_v23, %v1145_v22  ;;  %v1163_v29 = vld [vmem:[%s1078_s25 + $0xa0] sm:$0xff]  ;;  %v1166_v30 = vld [vmem:[%s1078_s25 + $0xa8] sm:$0xff]  ;;  %v1169_v31 = vld [vmem:[%s1078_s25 + $0xb0] sm:$0xff]  ;;  %v304_v33 = vadd.f32 %v1160_v28, %v1157_v27  ;;  %v848_v51 = vpop.eup %847 }
  0x31   : > { %v1172_v32 = vld [vmem:[%s1078_s25 + $0xb8] sm:$0xff]  ;;  %v307_v34 = vadd.f32 %v1166_v30, %v1163_v29  ;;  %v1181_v36 = vld [vmem:[%s1078_s25 + $0xc0] sm:$0xff]  ;;  %v1184_v37 = vld [vmem:[%s1078_s25 + $0xc8] sm:$0xff]  ;;  %v326_v53 = vmul.f32 256.0, %v848_v51  ;;  %vm330_vm0 = vweird.f32 %v848_v51 }
  0x32   : > { %v310_v35 = vadd.f32 %v1172_v32, %v1169_v31  ;;  %v1187_v38 = vld [vmem:[%s1078_s25 + $0xd0] sm:$0xff]  ;;  %v1190_v39 = vld [vmem:[%s1078_s25 + $0xd8] sm:$0xff]  ;;  %v1193_v40 = vld [vmem:[%s1078_s25 + $0xe0] sm:$0xff]  ;;  %v313_v42 = vadd.f32 %v1184_v37, %v1181_v36 }
  0x33   : > { %v1196_v41 = vld [vmem:[%s1078_s25 + $0xe8] sm:$0xff]  ;;  %v316_v43 = vadd.f32 %v1190_v39, %v1187_v38  ;;  %v1205_v45 = vld [vmem:[%s1078_s25 + $0xf0] sm:$0xff]  ;;  %v1208_v46 = vld [vmem:[%s1078_s25 + $0xf8] sm:$0xff]  ;;  %v327_v56 = vsub.f32 1.0, %v326_v53  ;;  %s684_s25 = scalar_lea.hbm %s1432_s5, %s778_s14 }
  0x34   : > { %281 = vadd.xlane.f32.xlu0 %v280_v15  ;;  %v319_v44 = vadd.f32 %v1196_v41, %v1193_v40  ;;  %v322_v47 = vadd.f32 %v1208_v46, %v1205_v45  ;;  %v363_v49 = vld [vmem:[%s1428_s1 + $0x78] sm:$0xff]  ;;  %v362_v50 = vld [vmem:[%s1428_s1 + $0x70] sm:$0xff]  ;;  %v361_v52 = vld [vmem:[%s1428_s1 + $0x68] sm:$0xff]  ;;  %s687_s13 = sshll.u32 %s684_s25, 4  ;;  %s688_s13 = int_to_ptr.hbm [resolvable:$true] %s687_s13 }
  0x35   : > { %287 = vadd.xlane.f32.xlu1 %v286_v16  ;;  %445 = vmatpush.msra.mxu0 %v363_v49  ;;  %v360_v54 = vld [vmem:[%s1428_s1 + $0x60] sm:$0xff]  ;;  %v359_v55 = vld [vmem:[%s1428_s1 + $0x58] sm:$0xff]  ;;  %v358_v57 = vld [vmem:[%s1428_s1 + $0x50] sm:$0xff]  ;;  %v328_v59 = vmul.f32 %v848_v51, %v327_v56  ;;  %s897_s22 = sshra.s32 %s688_s13, 4  ;;  %s898_s22 = int_to_ptr.hbm [resolvable:$true] %s897_s22 }
  0x36   : > { %293 = vadd.xlane.f32.xlu2 %v292_v17  ;;  %v357_v58 = vld [vmem:[%s1428_s1 + $0x48] sm:$0xff]  ;;  %v356_v60 = vld [vmem:[%s1428_s1 + $0x40] sm:$0xff]  ;;  %v355_v61 = vld [vmem:[%s1428_s1 + $0x38] sm:$0xff]  ;;  %s899_s16 = scalar_lea.hbm %s898_s22, 256  ;;  %p904_p0 = scmp.lt.s32.totalorder %s898_s22, %s1432_s5 }
  0x37   : > { %446 = vmatpush.msra.mxu0 %v362_v50  ;;  %v329_v62 = vadd.f32 %v848_v51, %v328_v59  ;;  %v354_v3 = vld [vmem:[%s1428_s1 + $0x30] sm:$0xff]  ;;  %v353_v16 = vld [vmem:[%s1428_s1 + $0x28] sm:$0xff]  ;;  %p900_p6 = scmp.ne.s32.totalorder %s898_s22, %s899_s16  ;;  %p905_p1 = scmp.lt.s32.totalorder %s903_s8, %s899_s16 }
  0x39   : > { %447 = vmatpush.msra.mxu0 %v361_v52  ;;  %v1245_v17 = vsel %vm330_vm0, %v848_v51, %v329_v62  ;;  %v349_v52 = vld [vmem:[%s1428_s1 + $0x8] sm:$0xff]  ;;  %vm468_vm0 = vcmask 64512   ;;  %p901_p9 = pnand %p900_p6, %p1036_p11  ;;  %p906_p3 = por %p905_p1, %p904_p0 }
  0x3b   : > { %448 = vmatpush.msra.mxu0 %v360_v54  ;;  %p902_p13 = pneg %p901_p9 }
  0x3c   : > { %296 = vadd.xlane.f32.xlu0 %v295_v24  ;;  %v352_v24 = vld [vmem:[%s1428_s1 + $0x20] sm:$0xff] }
  0x3d   : > { %299 = vadd.xlane.f32.xlu1 %v298_v25  ;;  %449 = vmatpush.msra.mxu0 %v359_v55  ;;  %v1251_v25 = vand.u32 127, %v381_v7  ;;  %v348_v55 = vld [vmem:[%s1428_s1] sm:$0xff]  ;;  %p907_p4 = pnand %p906_p3, %p902_p13 }
  0x3e   : > { %302 = vadd.xlane.f32.xlu2 %v301_v26  ;;  %v351_v26 = vld [vmem:[%s1428_s1 + $0x18] sm:$0xff] }
  0x3f   : > { %450 = vmatpush.msra.mxu0 %v358_v57  ;;  %v392_v48 = vadd.s32 4294967272, %v1251_v25  ;;  %v396_v59 = vadd.s32 4294967264, %v1251_v25  ;;  %v400_v62 = vadd.s32 4294967256, %v1251_v25 }
  0x41   : > { %451 = vmatpush.msra.mxu0 %v357_v58 }
  0x43   : > { %452 = vmatpush.msra.mxu0 %v356_v60 }
  0x44   : > { %305 = vadd.xlane.f32.xlu0 %v304_v33 }
  0x45   : > { %308 = vadd.xlane.f32.xlu1 %v307_v34  ;;  %453 = vmatpush.msra.mxu0 %v355_v61  ;;  %v384_v34 = vadd.s32 4294967288, %v1251_v25 }
  0x46   : > { %311 = vadd.xlane.f32.xlu2 %v310_v35  ;;  %v388_v35 = vadd.s32 4294967280, %v1251_v25 }
  0x47   : > { %454 = vmatpush.msra.mxu0 %v354_v3  ;;  %v404_v3 = vadd.s32 4294967248, %v1251_v25 }
  0x49   : > { %455 = vmatpush.msra.mxu0 %v353_v16 }
  0x4b   : > { %456 = vmatpush.msra.mxu0 %v352_v24 }
  0x4c   : > { %314 = vadd.xlane.f32.xlu0 %v313_v42 }
  0x4d   : > { %317 = vadd.xlane.f32.xlu1 %v316_v43  ;;  %457 = vmatpush.msra.mxu0 %v351_v26 }
  0x4e   : > { %320 = vadd.xlane.f32.xlu2 %v319_v44  ;;  %v350_v44 = vld [vmem:[%s1428_s1 + $0x10] sm:$0xff] }
  0x4f   : > { %458 = vmatpush.msra.mxu0 %v350_v44 }
  0x51   : > { %459 = vmatpush.msra.mxu0 %v349_v52 }
  0x53   : > { %460 = vmatpush.msra.mxu0 %v348_v55 }
  0x54   : > { %323 = vadd.xlane.f32.xlu0 %v322_v47 }
  0x9f   : > { %v279_v63 = vpop.xlane.xlu0 %278 }
  0xa0   : > { %v285_v8 = vpop.xlane.xlu1 %284  ;;  %v332_v33 = vmul.f32 %v1245_v17, %v279_v63 }
  0xa1   : > { %v291_v15 = vpop.xlane.xlu2 %290  ;;  %v334_v42 = vmul.f32 %v1245_v17, %v285_v8 }
  0xa2   : > { %v383_v53 = vperm.slane %v332_v33, %v1251_v25  ;;  %v336_v60 = vmul.f32 %v1245_v17, %v291_v15 }
  0xa3   : > { %v389_v56 = vperm.slane %v334_v42, %v388_v35  ;;  %v408_v42 = vadd.s32 4294967240, %v1251_v25 }
  0xa7   : > { %v282_v43 = vpop.xlane.xlu0 %281 }
  0xa8   : > { %v333_v47 = vmul.f32 %v1245_v17, %v282_v43  ;;  %v288_v49 = vpop.xlane.xlu1 %287 }
  0xa9   : > { %v294_v50 = vpop.xlane.xlu2 %293  ;;  %v335_v51 = vmul.f32 %v1245_v17, %v288_v49 }
  0xaa   : > { %v385_v54 = vperm.slane %v333_v47, %v384_v34  ;;  %v337_v63 = vmul.f32 %v1245_v17, %v294_v50  ;;  %v397_v34 = vperm.slane %v336_v60, %v396_v59  ;;  %v412_v47 = vadd.s32 4294967232, %v1251_v25 }
  0xab   : > { %v393_v58 = vperm.slane %v335_v51, %v392_v48  ;;  %v416_v51 = vadd.s32 4294967224, %v1251_v25 }
  0xac   : > { %v387_v57 = vsel %vm386_vm1, %v385_v54, %v383_v53  ;;  %v401_v35 = vperm.slane %v337_v63, %v400_v62  ;;  %v424_v62 = vadd.s32 4294967208, %v1251_v25 }
  0xad   : > { %v391_v61 = vsel %vm390_vm2, %v389_v56, %v387_v57 }
  0xae   : > { %v395_v16 = vsel %vm394_vm3, %v393_v58, %v391_v61  ;;  %v420_v58 = vadd.s32 4294967216, %v1251_v25 }
  0xaf   : > { %v297_v8 = vpop.xlane.xlu0 %296  ;;  %v399_v43 = vsel %vm398_vm4, %v397_v34, %v395_v16 }
  0xb0   : > { %v338_v24 = vmul.f32 %v1245_v17, %v297_v8  ;;  %v300_v26 = vpop.xlane.xlu1 %299  ;;  %v403_v49 = vsel %vm402_vm5, %v401_v35, %v399_v43  ;;  %v432_v35 = vadd.s32 4294967192, %v1251_v25 }
  0xb1   : > { %v303_v33 = vpop.xlane.xlu2 %302  ;;  %v339_v15 = vmul.f32 %v1245_v17, %v300_v26 }
  0xb2   : > { %v405_v44 = vperm.slane %v338_v24, %v404_v3  ;;  %v340_v48 = vmul.f32 %v1245_v17, %v303_v33  ;;  %v428_v24 = vadd.s32 4294967200, %v1251_v25 }
  0xb3   : > { %v409_v50 = vperm.slane %v339_v15, %v408_v42 }
  0xb4   : > { %v407_v52 = vsel %vm406_vm6, %v405_v44, %v403_v49  ;;  %v413_v57 = vperm.slane %v340_v48, %v412_v47  ;;  %v436_v48 = vadd.s32 4294967184, %v1251_v25 }
  0xb5   : > { %v411_v60 = vsel %vm410_vm7, %v409_v50, %v407_v52 }
  0xb6   : > { %v415_v3 = vsel %vm414_vm8, %v413_v57, %v411_v60 }
  0xb7   : > { %v306_v53 = vpop.xlane.xlu0 %305 }
  0xb8   : > { %v341_v54 = vmul.f32 %v1245_v17, %v306_v53  ;;  %v309_v55 = vpop.xlane.xlu1 %308  ;;  %v440_v53 = vadd.s32 4294967176, %v1251_v25  ;;  %v364_v25 = vld [vmem:[%s1429_s2] sm:$0x1] }
  0xb9   : > { %v312_v56 = vpop.xlane.xlu2 %311  ;;  %v342_v59 = vmul.f32 %v1245_v17, %v309_v55 }
  0xba   : > { %v417_v61 = vperm.slane %v341_v54, %v416_v51  ;;  %v343_v63 = vmul.f32 %v1245_v17, %v312_v56 }
  0xbb   : > { %v421_v8 = vperm.slane %v342_v59, %v420_v58 }
  0xbc   : > { %v419_v16 = vsel %vm418_vm9, %v417_v61, %v415_v3  ;;  %v425_v33 = vperm.slane %v343_v63, %v424_v62  ;;  %v466_v61 = vld [vmem:[%s1430_s3] sm:$0xff]  ;;  %v1304_v3 = vshrl.u32 %v381_v7, 7 }
  0xbd   : > { %v423_v43 = vsel %vm422_vm10, %v421_v8, %v419_v16  ;;  %487 = vmatpush.msra.mxu1 %v466_v61 }
  0xbe   : > { %v427_v50 = vsel %vm426_vm11, %v425_v33, %v423_v43  ;;  %830 = vset.pattern.permute.xlu1 %v1304_v3  ;;  %v526_v8 = vadd.s32 16, %v1304_v3  ;;  %v520_v16 = vadd.s32 8, %v1304_v3  ;;  %v562_v61 = vadd.s32 64, %v1304_v3 }
  0xbf   : > { %v315_v26 = vpop.xlane.xlu0 %314 }
  0xc0   : > { %v344_v34 = vmul.f32 %v1245_v17, %v315_v26  ;;  %v318_v42 = vpop.xlane.xlu1 %317  ;;  %832 = vset.pattern.permute.xlu0 %v526_v8  ;;  %831 = vset.pattern.permute.xlu2 %v520_v16  ;;  %v592_v8 = vadd.s32 104, %v1304_v3 }
  0xc1   : > { %v321_v15 = vpop.xlane.xlu2 %320  ;;  %v345_v44 = vmul.f32 %v1245_v17, %v318_v42 }
  0xc2   : > { %v429_v47 = vperm.slane %v344_v34, %v428_v24  ;;  %v346_v49 = vmul.f32 %v1245_v17, %v321_v15  ;;  %v467_v24 = vld [vmem:[%s1431_s4] sm:$0x1] }
  0xc3   : > { %v433_v51 = vperm.slane %v345_v44, %v432_v35 }
  0xc4   : > { %v431_v52 = vsel %vm430_vm12, %v429_v47, %v427_v50  ;;  %v437_v54 = vperm.slane %v346_v49, %v436_v48 }
  0xc5   : > { %v435_v57 = vsel %vm434_vm13, %v433_v51, %v431_v52 }
  0xc6   : > { %v439_v59 = vsel %vm438_vm14, %v437_v54, %v435_v57  ;;  %v568_v54 = vadd.s32 72, %v1304_v3  ;;  %v598_v57 = vadd.s32 112, %v1304_v3 }
  0xc7   : > { %v324_v55 = vpop.xlane.xlu0 %323 }
  0xc8   : > { %v347_v56 = vmul.f32 %v1245_v17, %v324_v55  ;;  %v532_v55 = vadd.s32 24, %v1304_v3 }
  0xca   : > { %v441_v58 = vperm.slane %v347_v56, %v440_v53  ;;  %v538_v56 = vadd.s32 32, %v1304_v3 }
  0xcc   : > { %v443_v60 = vsel %vm442_vm15, %v441_v58, %v439_v59  ;;  %v544_v58 = vadd.s32 40, %v1304_v3  ;;  %v550_v59 = vadd.s32 48, %v1304_v3 }
  0xcd   : > { %461 = vmatmul.f32.vlgmr.msra.gmra.mxu0 %v443_v60  ;;  %v556_v60 = vadd.s32 56, %v1304_v3 }
 0x14a   : > { %v462_v62 = vpop.f32.mrf.mxu0 }
 0x14b   : > { %v463_v63 = vadd.f32 %v462_v62, %v364_v25  ;;  %v604_v25 = vadd.s32 120, %v1304_v3  ;;  %v574_v62 = vadd.s32 80, %v1304_v3 }
 0x14d   : > { %v465_v17 = vmax.f32 %v463_v63, 0.0  ;;  %v580_v63 = vadd.s32 88, %v1304_v3 }
 0x14f   : > { %770 = vmatmul.msk.f32.vlgmr.msra.gmra.mxu1 %vm468_vm0, %v465_v17  ;;  %v586_v17 = vadd.s32 96, %v1304_v3 }
 0x1cc   : > { %v489_v26 = vpop.f32.mrf.mxu1 }
 0x1cd   : > { %v490_v33 = vadd.f32 %v489_v26, %v467_v24 }
 0x1cf   : > { %v771_v34 = vmul.f32 -1.442695, %v490_v33 }
 0x1d1   : > { %849 = vpow2.f32 %v771_v34 }
 0x1d7   : > { %v850_v35 = vpop.eup %849 }
 0x1d8   : > { %v495_v42 = vadd.f32 1.0, %v850_v35 }
 0x1da   : > { %851 = vrcp.f32 %v495_v42  ;;  %v507_v44 = vand.u32 2147483648, %v495_v42  ;;  %v505_v48 = vand.u32 2147483647, %v495_v42  ;;  %vm501_vm2 = vweird.f32 %v495_v42 }
 0x1dc   : > { %v508_v50 = vor.u32 1.1754944e-38, %v507_v44  ;;  %vm506_vm4 = vcmp.eq.f32.partialorder %v505_v48, 8.507059e+37 }
 0x1e0   : > { %v852_v7 = vpop.eup %851 }
 0x1e1   : > { %v497_v15 = vmul.f32 %v852_v7, %v495_v42  ;;  %vm502_vm1 = vweird.f32 %v852_v7 }
 0x1e2   : > { %vm503_vm3 = vmor %vm501_vm2, %vm502_vm1 }
 0x1e3   : > { %v498_v43 = vsub.f32 1.0, %v497_v15 }
 0x1e5   : > { %v499_v47 = vmul.f32 %v852_v7, %v498_v43 }
 0x1e7   : > { %v500_v49 = vadd.f32 %v852_v7, %v499_v47 }
 0x1e9   : > { %v504_v51 = vsel %vm503_vm3, %v852_v7, %v500_v49 }
 0x1ea   : > { %v509_v52 = vsel %vm506_vm4, %v508_v50, %v504_v51 }
 0x1eb   : > { %v511_v53 = vperm.slane %v509_v52, 0 }
 0x1ed   : > { %528 = vperm.xlu0 %832, %v511_v53   ;;  %522 = vperm.xlu2 %831, %v511_v53  }
 0x1ee   : > { %516 = vperm.xlu1 %830, %v511_v53  }
 0x1f5   : > { %839 = vset.pattern.permute.xlu0 %v568_v54  ;;  %833 = vset.pattern.permute.xlu2 %v532_v55 }
 0x1f6   : > { %834 = vset.pattern.permute.xlu1 %v538_v56 }
 0x1fd   : > { %570 = vperm.xlu0 %839, %v511_v53   ;;  %534 = vperm.xlu2 %833, %v511_v53  }
 0x1fe   : > { %540 = vperm.xlu1 %834, %v511_v53  }
 0x205   : > { %844 = vset.pattern.permute.xlu0 %v598_v57  ;;  %835 = vset.pattern.permute.xlu2 %v544_v58 }
 0x206   : > { %836 = vset.pattern.permute.xlu1 %v550_v59 }
 0x20d   : > { %600 = vperm.xlu0 %844, %v511_v53   ;;  %546 = vperm.xlu2 %835, %v511_v53  }
 0x20e   : > { %552 = vperm.xlu1 %836, %v511_v53  }
 0x215   : > { %837 = vset.pattern.permute.xlu2 %v556_v60  ;;  %846 = vset.pattern.permute.xlu0 %v604_v25 }
 0x216   : > { %838 = vset.pattern.permute.xlu1 %v562_v61 }
 0x21d   : > { %558 = vperm.xlu2 %837, %v511_v53  }
 0x21e   : > { %564 = vperm.xlu1 %838, %v511_v53  }
 0x225   : > { %840 = vset.pattern.permute.xlu2 %v574_v62 }
 0x226   : > { %841 = vset.pattern.permute.xlu1 %v580_v63 }
 0x22d   : > { %576 = vperm.xlu2 %840, %v511_v53  }
 0x22e   : > { %582 = vperm.xlu1 %841, %v511_v53  }
 0x235   : > { %842 = vset.pattern.permute.xlu2 %v586_v17 }
 0x236   : > { %843 = vset.pattern.permute.xlu1 %v592_v8 }
 0x23d   : > { %588 = vperm.xlu2 %842, %v511_v53  }
 0x23e   : > { %594 = vperm.xlu1 %843, %v511_v53  }
 0x245   : > { %845 = vset.pattern.permute.xlu2 %v604_v25 }
 0x247   : > { %v523_v16 = vpop.permute.xlu2 %522 }
 0x248   : > { %v610_v24 = vmul.f32 %v523_v16, %v1109_v9  ;;  %v611_v26 = vmul.f32 %v523_v16, %v1112_v10 }
 0x24a   : > { %642 = vst [vmem:[%s1329_s7 + $0x10] sm:$0xff] %v610_v24 }
 0x24b   : > { %643 = vst [vmem:[%s1329_s7 + $0x18] sm:$0xff] %v611_v26 }
 0x24d   : > { %606 = vperm.xlu2 %845, %v511_v53  }
 0x257   : > { %v535_v3 = vpop.permute.xlu2 %534 }
 0x258   : > { %v614_v33 = vmul.f32 %v535_v3, %v1115_v11  ;;  %v615_v9 = vmul.f32 %v535_v3, %v1118_v12 }
 0x25a   : > { %646 = vst [vmem:[%s1329_s7 + $0x30] sm:$0xff] %v614_v33 }
 0x25b   : > { %647 = vst [vmem:[%s1329_s7 + $0x38] sm:$0xff] %v615_v9 }
 0x25f   : > { %v529_v10 = vpop.permute.xlu0 %528 }
 0x260   : > { %v612_v34 = vmul.f32 %v529_v10, %v1091_v2  ;;  %v613_v35 = vmul.f32 %v529_v10, %v1096_v4  ;;  %v517_v42 = vpop.permute.xlu1 %516 }
 0x261   : > { %v608_v7 = vmul.f32 %v517_v42, %v1085_v0  ;;  %v609_v15 = vmul.f32 %v517_v42, %v1088_v1 }
 0x262   : > { %644 = vst [vmem:[%s1329_s7 + $0x20] sm:$0xff] %v612_v34 }
 0x263   : > { %645 = vst [vmem:[%s1329_s7 + $0x28] sm:$0xff] %v613_v35 }
 0x264   : > { %640 = vst [vmem:[%s1329_s7] sm:$0xff] %v608_v7 }
 0x265   : > { %641 = vst [vmem:[%s1329_s7 + $0x8] sm:$0xff] %v609_v15 }
 0x267   : > { %v547_v11 = vpop.permute.xlu2 %546 }
 0x268   : > { %v618_v12 = vmul.f32 %v547_v11, %v1121_v13  ;;  %v619_v2 = vmul.f32 %v547_v11, %v1124_v14 }
 0x26a   : > { %650 = vst [vmem:[%s1329_s7 + $0x50] sm:$0xff] %v618_v12 }
 0x26b   : > { %651 = vst [vmem:[%s1329_s7 + $0x58] sm:$0xff] %v619_v2 }
 0x26f   : > { %v571_v0 = vpop.permute.xlu0 %570 }
 0x270   : > { %v626_v1 = vmul.f32 %v571_v0, %v1157_v27  ;;  %v627_v4 = vmul.f32 %v571_v0, %v1160_v28  ;;  %v541_v43 = vpop.permute.xlu1 %540 }
 0x271   : > { %v616_v44 = vmul.f32 %v541_v43, %v1099_v5  ;;  %v617_v47 = vmul.f32 %v541_v43, %v1102_v6 }
 0x272   : > { %658 = vst [vmem:[%s1329_s7 + $0x90] sm:$0xff] %v626_v1 }
 0x273   : > { %659 = vst [vmem:[%s1329_s7 + $0x98] sm:$0xff] %v627_v4 }
 0x274   : > { %648 = vst [vmem:[%s1329_s7 + $0x40] sm:$0xff] %v616_v44 }
 0x275   : > { %649 = vst [vmem:[%s1329_s7 + $0x48] sm:$0xff] %v617_v47 }
 0x277   : > { %v559_v13 = vpop.permute.xlu2 %558 }
 0x278   : > { %v622_v14 = vmul.f32 %v559_v13, %v1139_v20  ;;  %v623_v27 = vmul.f32 %v559_v13, %v1142_v21 }
 0x27a   : > { %654 = vst [vmem:[%s1329_s7 + $0x70] sm:$0xff] %v622_v14 }
 0x27b   : > { %655 = vst [vmem:[%s1329_s7 + $0x78] sm:$0xff] %v623_v27 }
 0x27f   : > { %v601_v5 = vpop.permute.xlu0 %600 }
 0x280   : > { %v636_v6 = vmul.f32 %v601_v5, %v1193_v40  ;;  %v637_v28 = vmul.f32 %v601_v5, %v1196_v41  ;;  %v553_v48 = vpop.permute.xlu1 %552 }
 0x281   : > { %v620_v49 = vmul.f32 %v553_v48, %v1133_v18  ;;  %v621_v50 = vmul.f32 %v553_v48, %v1136_v19 }
 0x282   : > { %668 = vst [vmem:[%s1329_s7 + $0xe0] sm:$0xff] %v636_v6 }
 0x283   : > { %669 = vst [vmem:[%s1329_s7 + $0xe8] sm:$0xff] %v637_v28 }
 0x284   : > { %652 = vst [vmem:[%s1329_s7 + $0x60] sm:$0xff] %v620_v49 }
 0x285   : > { %653 = vst [vmem:[%s1329_s7 + $0x68] sm:$0xff] %v621_v50 }
 0x287   : > { %v577_v20 = vpop.permute.xlu2 %576 }
 0x288   : > { %v628_v21 = vmul.f32 %v577_v20, %v1163_v29  ;;  %v629_v40 = vmul.f32 %v577_v20, %v1166_v30 }
 0x28a   : > { %660 = vst [vmem:[%s1329_s7 + $0xa0] sm:$0xff] %v628_v21 }
 0x28b   : > { %661 = vst [vmem:[%s1329_s7 + $0xa8] sm:$0xff] %v629_v40 }
 0x290   : > { %v565_v41 = vpop.permute.xlu1 %564 }
 0x291   : > { %v624_v18 = vmul.f32 %v565_v41, %v1145_v22  ;;  %v625_v19 = vmul.f32 %v565_v41, %v1148_v23 }
 0x293   : > { %656 = vst [vmem:[%s1329_s7 + $0x80] sm:$0xff] %v624_v18 }
 0x294   : > { %657 = vst [vmem:[%s1329_s7 + $0x88] sm:$0xff] %v625_v19 }
 0x297   : > { %v589_v51 = vpop.permute.xlu2 %588 }
 0x298   : > { %v632_v52 = vmul.f32 %v589_v51, %v1181_v36  ;;  %v633_v29 = vmul.f32 %v589_v51, %v1184_v37 }
 0x29a   : > { %664 = vst [vmem:[%s1329_s7 + $0xc0] sm:$0xff] %v632_v52 }
 0x29b   : > { %665 = vst [vmem:[%s1329_s7 + $0xc8] sm:$0xff] %v633_v29 }
 0x2a0   : > { %v583_v30 = vpop.permute.xlu1 %582 }
 0x2a1   : > { %v630_v53 = vmul.f32 %v583_v30, %v1169_v31  ;;  %v631_v22 = vmul.f32 %v583_v30, %v1172_v32 }
 0x2a3   : > { %662 = vst [vmem:[%s1329_s7 + $0xb0] sm:$0xff] %v630_v53 }
 0x2a4   : > { %663 = vst [vmem:[%s1329_s7 + $0xb8] sm:$0xff] %v631_v22 }
 0x2a7   : > { %v607_v23 = vpop.permute.xlu2 %606 }
 0x2a8   : > { %v638_v54 = vmul.f32 %v607_v23, %v1205_v45  ;;  %v639_v36 = vmul.f32 %v607_v23, %v1208_v46 }
 0x2aa   : > { %670 = vst [vmem:[%s1329_s7 + $0xf0] sm:$0xff] %v638_v54 }
 0x2ab   : > { %671 = vst [vmem:[%s1329_s7 + $0xf8] sm:$0xff] %v639_v36 }
 0x2b0   : > { %v595_v31 = vpop.permute.xlu1 %594 }
 0x2b1   : > { %v634_v32 = vmul.f32 %v595_v31, %v1187_v38  ;;  %v635_v37 = vmul.f32 %v595_v31, %v1190_v39 }
 0x2b3   : > { %666 = vst [vmem:[%s1329_s7 + $0xd0] sm:$0xff] %v634_v32 }
 0x2b4   : > { %667 = vst [vmem:[%s1329_s7 + $0xd8] sm:$0xff] %v635_v37 }
 0x2b5   : > { %910 = shalt.err (!%p907_p4)
}
 0x2b6   : > { %s954_s12 = smov 256   ;;  %s955_s10 = smov 16  }
 0x2b7   : > { %781 = dma.vmem_to_hbm [thread:$0]  (%p1036_p11), %s686_s29, 4096, %s688_s13, %s673_s15, %s954_s12, %s954_s12, %s955_s10  }
 0x2b8 PF: > { %s702_s7 = sand.u32 1, %s937_s18   ;;  %p1438_p7 = scmp.ge.s32.totalorder %s949_s21, 2 }
 0x2b9   : > { %s703_s14 = scalar_lea.sflag [#allocation4], %s702_s7 }
 0x2ba   : > { %p788_p5 = pnand %p1438_p7, %p1040_p12 }
 0x2bc   : > { %p789_p8 = pneg %p788_p5 }
 0x2be   : > { %932 = dma.done.wait (%p789_p8), %s703_s14, 4096  }
 0x2bf   : > { %934 = vsyncadd (%p789_p8), %s703_s14, 4294963200  ;;  %p18_p10 = scmp.ge.s32.totalorder %s1011_s24, 4   ;;  %s1439_s18 = smov %s941_s19 }
 0x2c0   : > { %s1440_s19 = smov %s945_s20  ;;  %s1441_s20 = smov %s1023_s27 }
 0x2c1   : > { %s1442_s21 = smov %s1011_s24  ;;  %20 = sbr.rel (!%p18_p10) target bundleno = 5 (0x5), region = 85 }
 0x2c6   :  { %709 = vsyncpa [#allocation3], 1 }
 0x2c7   :  { %711 = vsyncpa [#allocation3 + $0x1], 1 }
 0x2c8   :  { %712 = vsyncpa [#allocation4], 1 }
 0x2c9   :  { %714 = vsyncpa [#allocation4 + $0x1], 1 }

// kernel: tpu_custom_call.1
= control target key start
LH: loop header
LB: loop body
LE: loop exit
PB: predicated region body
PF: predicated region fallthrough
CT: control target
= control target key end

     0   :  { %10 = vsyncpa [#allocation3], 0  ;;  %s1427_s0 = inlined_call_operand.hbm [shape: f32[2,128,256], index: 0, kind: input, shape index: {}]   ;;  %s1428_s1 = inlined_call_operand.vmem [shape: f32[128,8], index: 1, kind: input, shape index: {}]   ;;  %s1429_s2 = inlined_call_operand.vmem [shape: f32[1,8], index: 2, kind: input, shape index: {}]   ;;  %s1430_s3 = inlined_call_operand.vmem [shape: f32[8,128], index: 3, kind: input, shape index: {}]   ;;  %s1431_s4 = inlined_call_operand.vmem [shape: f32[1,128], index: 4, kind: input, shape index: {}]   ;;  %s1432_s5 = inlined_call_operand.hbm [shape: f32[2,128,256], index: 5, kind: output, shape index: {}]  }
   0x1   :  { %12 = vsyncpa [#allocation3 + $0x1], 0 }
   0x2   :  { %13 = vsyncpa [#allocation4], 0 }
   0x3   :  { %15 = vsyncpa [#allocation4 + $0x1], 0  ;;  %s986_s18 = smov 0   ;;  %s988_s19 = smov 0  }
   0x4   :  { %s990_s20 = smov 0   ;;  %s992_s21 = smov 0  }
   0x5 LB: > { %s1007_s22 = sadd.s32 4294967295, %s949_s21   ;;  %s761_s23 = sadd.s32 4294967294, %s949_s21   ;;  %s949_s21 = sphi %s992_s21, %s1442_s21   ;;  %s945_s20 = sphi %s990_s20, %s1441_s20   ;;  %s941_s19 = sphi %s988_s19, %s1440_s19   ;;  %s937_s18 = sphi %s986_s18, %s1439_s18  }
   0x6   : > { %s1011_s24 = sadd.s32 1, %s949_s21   ;;  %s28_s25 = sadd.s32 1, %s945_s20 }
   0x7   : > { %s25_s26 = ssub.s32 %s949_s21, %s1011_s24  ;;  %p35_p0 = scmp.ne.s32.totalorder %s945_s20, %s941_s19 }
   0x8   : > { %p26_p1 = scmp.eq.s32.totalorder %s25_s26, 0  ;;  %p36_p2 = scmp.eq.s32.totalorder %s949_s21, 0 }
   0x9   : > { %p41_p3 = scmp.ne.s32.totalorder %s941_s19, %s937_s18  ;;  %p42_p4 = scmp.eq.s32.totalorder %s1007_s22, 0 }
   0xa   : > { %s1023_s27 = scalar_select %p26_p1, %s945_s20, %s28_s25  }
   0xb   : > { %p1025_p5 = por %p36_p2, %p35_p0  ;;  %p1029_p6 = por %p42_p4, %p41_p3 }
   0xc   : > { %p149_p7 = scmp.eq.s32.totalorder %s1007_s22, 1  ;;  %p155_p8 = scmp.eq.s32.totalorder %s761_s23, 1 }
   0xd   : > { %p791_p10 = scmp.lt.s32.totalorder %s949_s21, 2  ;;  %s187_s7 = sand.u32 1, %s945_s20  }
   0xe   : > { %p1036_p11 = por %p149_p7, %p35_p0  ;;  %p1040_p12 = por %p155_p8, %p41_p3 }
   0xf   : > { %s777_s8 = sshll.u32 %s949_s21, 8  ;;  %s764_s9 = sshll.u32 %s187_s7, 8 }
  0x10   : > { %s196_s12 = scalar_lea.hbm %s1427_s0, %s777_s8  ;;  %s191_s14 = scalar_lea.vmem [#allocation2], %s764_s9 }
  0x11   : > { %s197_s13 = sshll.u32 %s196_s12, 4  ;;  %s199_s15 = sshll.u32 %s191_s14, 4  ;;  %s198_s13 = int_to_ptr.hbm [resolvable:$true] %s197_s13  ;;  %s200_s15 = int_to_ptr.vmem [resolvable:$true] %s199_s15 }
  0x12   : > { %p1051_p13 = pnand %p791_p10, %p1025_p5  ;;  %p767_p0 = scmp.ge.s32.totalorder %s949_s21, 1 }
  0x13   : > { %p207_p1 = scmp.lt.s32.totalorder %s949_s21, 3  ;;  %s188_s17 = scalar_lea.sflag [#allocation3], %s187_s7 }
  0x14   : > { %s853_s23 = sshra.s32 %s198_s13, 4  ;;  %p857_p3 = pneg %p1051_p13  ;;  %s854_s23 = int_to_ptr.hbm [resolvable:$true] %s853_s23 }
  0x15   : > { %s855_s25 = scalar_lea.hbm %s854_s23, 256  ;;  %s860_s28 = scalar_lea.hbm %s1427_s0, 512 }
  0x16   : > { %p856_p2 = scmp.ne.s32.totalorder %s854_s23, %s855_s25  ;;  %p861_p5 = scmp.lt.s32.totalorder %s854_s23, %s1427_s0 }
  0x17   : > { %p862_p8 = scmp.lt.s32.totalorder %s860_s28, %s855_s25 }
  0x18   : > { %p858_p4 = pnand %p857_p3, %p856_p2 }
  0x19   : > { %p863_p10 = por %p862_p8, %p861_p5 }
  0x1a   : > { %p859_p7 = pneg %p858_p4 }
  0x1c   : > { %p864_p9 = pnand %p863_p10, %p859_p7 }
  0x1e   : > { %867 = shalt.err (!%p864_p9)
}
  0x1f   : > { %s951_s7 = smov 256   ;;  %s952_s11 = smov 16  }
  0x20   : > { %786 = dma.hbm_to_vmem [thread:$0]  (!%p1051_p13), %s198_s13, 4096, %s200_s15, %s188_s17, %s951_s7, %s951_s7, %s952_s11  }
  0x21   : > { %p208_p2 = pnand %p767_p0, %p207_p1 }
  0x22   : > { %s1072_s12 = sand.u32 (!%p208_p2), 1, %s941_s19  }
  0x23   : > { %211 = sbr.rel (%p208_p2) target bundleno = 696 (0x2b8), region = 40  ;;  %s768_s14 = sshll.u32 (!%p208_p2), %s1072_s12, 8 }
  0x24   : > { %s214_s23 = scalar_lea.sflag (!%p208_p2), [#allocation3], %s1072_s12  ;;  %s1078_s25 = scalar_lea.vmem (!%p208_p2), [#allocation2], %s768_s14 }
  0x28   : > { %928 = dma.done.wait (%p1029_p6), %s214_s23, 4096  }
  0x29   : > { %930 = vsyncadd (%p1029_p6), %s214_s23, 4294963200  ;;  %v1085_v0 = vld [vmem:[%s1078_s25] sm:$0xff]  ;;  %v1088_v1 = vld [vmem:[%s1078_s25 + $0x8] sm:$0xff]  ;;  %v953_v48 = vmov 256.0   ;;  %vm386_vm1 = vcmask 130112   ;;  %vm390_vm2 = vcmask 195712  }
  0x2a   : > { %v1091_v2 = vld [vmem:[%s1078_s25 + $0x20] sm:$0xff]  ;;  %v277_v3 = vadd.f32 %v1088_v1, %v1085_v0  ;;  %v1096_v4 = vld [vmem:[%s1078_s25 + $0x28] sm:$0xff]  ;;  %v1109_v9 = vld [vmem:[%s1078_s25 + $0x10] sm:$0xff]  ;;  %847 = vrcp.f32 %v953_v48  ;;  %vm394_vm3 = vcmask 261312   ;;  %vm398_vm4 = vcmask 326912   ;;  %s1329_s7 = scalar_lea.vmem [#allocation5], %s768_s14 }
  0x2b   : > { %v1099_v5 = vld [vmem:[%s1078_s25 + $0x40] sm:$0xff]  ;;  %v1102_v6 = vld [vmem:[%s1078_s25 + $0x48] sm:$0xff]  ;;  %v283_v7 = vadd.f32 %v1096_v4, %v1091_v2  ;;  %v1112_v10 = vld [vmem:[%s1078_s25 + $0x18] sm:$0xff]  ;;  %vm402_vm5 = vcmask 392512   ;;  %vm406_vm6 = vcmask 458112   ;;  %vm410_vm7 = vcmask 523712  }
  0x2c   : > { %v289_v8 = vadd.f32 %v1102_v6, %v1099_v5  ;;  %278 = vadd.xlane.f32.xlu0 %v277_v3  ;;  %v1115_v11 = vld [vmem:[%s1078_s25 + $0x30] sm:$0xff]  ;;  %v1118_v12 = vld [vmem:[%s1078_s25 + $0x38] sm:$0xff]  ;;  %v280_v15 = vadd.f32 %v1112_v10, %v1109_v9  ;;  %v1133_v18 = vld [vmem:[%s1078_s25 + $0x60] sm:$0xff]  ;;  %vm414_vm8 = vcmask 589312   ;;  %vm418_vm9 = vcmask 654912   ;;  %s778_s14 = sshll.u32 %s1007_s22, 8 }
  0x2d   : > { %284 = vadd.xlane.f32.xlu1 %v283_v7  ;;  %v1121_v13 = vld [vmem:[%s1078_s25 + $0x50] sm:$0xff]  ;;  %v1124_v14 = vld [vmem:[%s1078_s25 + $0x58] sm:$0xff]  ;;  %v286_v16 = vadd.f32 %v1118_v12, %v1115_v11  ;;  %v1136_v19 = vld [vmem:[%s1078_s25 + $0x68] sm:$0xff]  ;;  %v381_v7 = vlaneseq  ;;  %vm422_vm10 = vcmask 720512   ;;  %vm426_vm11 = vcmask 786112   ;;  %s685_s29 = sshll.u32 %s1329_s7, 4  ;;  %s686_s29 = int_to_ptr.vmem [resolvable:$true] %s685_s29 }
  0x2e   : > { %290 = vadd.xlane.f32.xlu2 %v289_v8  ;;  %v292_v17 = vadd.f32 %v1124_v14, %v1121_v13  ;;  %v1139_v20 = vld [vmem:[%s1078_s25 + $0x70] sm:$0xff]  ;;  %v1142_v21 = vld [vmem:[%s1078_s25 + $0x78] sm:$0xff]  ;;  %v1145_v22 = vld [vmem:[%s1078_s25 + $0x80] sm:$0xff]  ;;  %v295_v24 = vadd.f32 %v1136_v19, %v1133_v18  ;;  %vm430_vm12 = vcmask 851712   ;;  %vm434_vm13 = vcmask 917312   ;;  %s673_s15 = scalar_lea.sflag [#allocation4], %s1072_s12 }
  0x2f   : > { %v1148_v23 = vld [vmem:[%s1078_s25 + $0x88] sm:$0xff]  ;;  %v298_v25 = vadd.f32 %v1142_v21, %v1139_v20  ;;  %v1157_v27 = vld [vmem:[%s1078_s25 + $0x90] sm:$0xff]  ;;  %v1160_v28 = vld [vmem:[%s1078_s25 + $0x98] sm:$0xff]  ;;  %vm438_vm14 = vcmask 982912   ;;  %vm442_vm15 = vcmask 1048512   ;;  %s903_s8 = scalar_lea.hbm %s1432_s5, 512 }
  0x30   : > { %v301_v26 = vadd.f32 %v1148_v23, %v1145_v22  ;;  %v1163_v29 = vld [vmem:[%s1078_s25 + $0xa0] sm:$0xff]  ;;  %v1166_v30 = vld [vmem:[%s1078_s25 + $0xa8] sm:$0xff]  ;;  %v1169_v31 = vld [vmem:[%s1078_s25 + $0xb0] sm:$0xff]  ;;  %v304_v33 = vadd.f32 %v1160_v28, %v1157_v27  ;;  %v848_v51 = vpop.eup %847 }
  0x31   : > { %v1172_v32 = vld [vmem:[%s1078_s25 + $0xb8] sm:$0xff]  ;;  %v307_v34 = vadd.f32 %v1166_v30, %v1163_v29  ;;  %v1181_v36 = vld [vmem:[%s1078_s25 + $0xc0] sm:$0xff]  ;;  %v1184_v37 = vld [vmem:[%s1078_s25 + $0xc8] sm:$0xff]  ;;  %v326_v53 = vmul.f32 256.0, %v848_v51  ;;  %vm330_vm0 = vweird.f32 %v848_v51 }
  0x32   : > { %v310_v35 = vadd.f32 %v1172_v32, %v1169_v31  ;;  %v1187_v38 = vld [vmem:[%s1078_s25 + $0xd0] sm:$0xff]  ;;  %v1190_v39 = vld [vmem:[%s1078_s25 + $0xd8] sm:$0xff]  ;;  %v1193_v40 = vld [vmem:[%s1078_s25 + $0xe0] sm:$0xff]  ;;  %v313_v42 = vadd.f32 %v1184_v37, %v1181_v36 }
  0x33   : > { %v1196_v41 = vld [vmem:[%s1078_s25 + $0xe8] sm:$0xff]  ;;  %v316_v43 = vadd.f32 %v1190_v39, %v1187_v38  ;;  %v1205_v45 = vld [vmem:[%s1078_s25 + $0xf0] sm:$0xff]  ;;  %v1208_v46 = vld [vmem:[%s1078_s25 + $0xf8] sm:$0xff]  ;;  %v327_v56 = vsub.f32 1.0, %v326_v53  ;;  %s684_s25 = scalar_lea.hbm %s1432_s5, %s778_s14 }
  0x34   : > { %281 = vadd.xlane.f32.xlu0 %v280_v15  ;;  %v319_v44 = vadd.f32 %v1196_v41, %v1193_v40  ;;  %v322_v47 = vadd.f32 %v1208_v46, %v1205_v45  ;;  %v363_v49 = vld [vmem:[%s1428_s1 + $0x78] sm:$0xff]  ;;  %v362_v50 = vld [vmem:[%s1428_s1 + $0x70] sm:$0xff]  ;;  %v361_v52 = vld [vmem:[%s1428_s1 + $0x68] sm:$0xff]  ;;  %s687_s13 = sshll.u32 %s684_s25, 4  ;;  %s688_s13 = int_to_ptr.hbm [resolvable:$true] %s687_s13 }
  0x35   : > { %287 = vadd.xlane.f32.xlu1 %v286_v16  ;;  %445 = vmatpush.msra.mxu0 %v363_v49  ;;  %v360_v54 = vld [vmem:[%s1428_s1 + $0x60] sm:$0xff]  ;;  %v359_v55 = vld [vmem:[%s1428_s1 + $0x58] sm:$0xff]  ;;  %v358_v57 = vld [vmem:[%s1428_s1 + $0x50] sm:$0xff]  ;;  %v328_v59 = vmul.f32 %v848_v51, %v327_v56  ;;  %s897_s22 = sshra.s32 %s688_s13, 4  ;;  %s898_s22 = int_to_ptr.hbm [resolvable:$true] %s897_s22 }
  0x36   : > { %293 = vadd.xlane.f32.xlu2 %v292_v17  ;;  %v357_v58 = vld [vmem:[%s1428_s1 + $0x48] sm:$0xff]  ;;  %v356_v60 = vld [vmem:[%s1428_s1 + $0x40] sm:$0xff]  ;;  %v355_v61 = vld [vmem:[%s1428_s1 + $0x38] sm:$0xff]  ;;  %s899_s16 = scalar_lea.hbm %s898_s22, 256  ;;  %p904_p0 = scmp.lt.s32.totalorder %s898_s22, %s1432_s5 }
  0x37   : > { %446 = vmatpush.msra.mxu0 %v362_v50  ;;  %v329_v62 = vadd.f32 %v848_v51, %v328_v59  ;;  %v354_v3 = vld [vmem:[%s1428_s1 + $0x30] sm:$0xff]  ;;  %v353_v16 = vld [vmem:[%s1428_s1 + $0x28] sm:$0xff]  ;;  %p900_p6 = scmp.ne.s32.totalorder %s898_s22, %s899_s16  ;;  %p905_p1 = scmp.lt.s32.totalorder %s903_s8, %s899_s16 }
  0x39   : > { %447 = vmatpush.msra.mxu0 %v361_v52  ;;  %v1245_v17 = vsel %vm330_vm0, %v848_v51, %v329_v62  ;;  %v349_v52 = vld [vmem:[%s1428_s1 + $0x8] sm:$0xff]  ;;  %vm468_vm0 = vcmask 64512   ;;  %p901_p9 = pnand %p900_p6, %p1036_p11  ;;  %p906_p3 = por %p905_p1, %p904_p0 }
  0x3b   : > { %448 = vmatpush.msra.mxu0 %v360_v54  ;;  %p902_p13 = pneg %p901_p9 }
  0x3c   : > { %296 = vadd.xlane.f32.xlu0 %v295_v24  ;;  %v352_v24 = vld [vmem:[%s1428_s1 + $0x20] sm:$0xff] }
  0x3d   : > { %299 = vadd.xlane.f32.xlu1 %v298_v25  ;;  %449 = vmatpush.msra.mxu0 %v359_v55  ;;  %v1251_v25 = vand.u32 127, %v381_v7  ;;  %v348_v55 = vld [vmem:[%s1428_s1] sm:$0xff]  ;;  %p907_p4 = pnand %p906_p3, %p902_p13 }
  0x3e   : > { %302 = vadd.xlane.f32.xlu2 %v301_v26  ;;  %v351_v26 = vld [vmem:[%s1428_s1 + $0x18] sm:$0xff] }
  0x3f   : > { %450 = vmatpush.msra.mxu0 %v358_v57  ;;  %v392_v48 = vadd.s32 4294967272, %v1251_v25  ;;  %v396_v59 = vadd.s32 4294967264, %v1251_v25  ;;  %v400_v62 = vadd.s32 4294967256, %v1251_v25 }
  0x41   : > { %451 = vmatpush.msra.mxu0 %v357_v58 }
  0x43   : > { %452 = vmatpush.msra.mxu0 %v356_v60 }
  0x44   : > { %305 = vadd.xlane.f32.xlu0 %v304_v33 }
  0x45   : > { %308 = vadd.xlane.f32.xlu1 %v307_v34  ;;  %453 = vmatpush.msra.mxu0 %v355_v61  ;;  %v384_v34 = vadd.s32 4294967288, %v1251_v25 }
  0x46   : > { %311 = vadd.xlane.f32.xlu2 %v310_v35  ;;  %v388_v35 = vadd.s32 4294967280, %v1251_v25 }
  0x47   : > { %454 = vmatpush.msra.mxu0 %v354_v3  ;;  %v404_v3 = vadd.s32 4294967248, %v1251_v25 }
  0x49   : > { %455 = vmatpush.msra.mxu0 %v353_v16 }
  0x4b   : > { %456 = vmatpush.msra.mxu0 %v352_v24 }
  0x4c   : > { %314 = vadd.xlane.f32.xlu0 %v313_v42 }
  0x4d   : > { %317 = vadd.xlane.f32.xlu1 %v316_v43  ;;  %457 = vmatpush.msra.mxu0 %v351_v26 }
  0x4e   : > { %320 = vadd.xlane.f32.xlu2 %v319_v44  ;;  %v350_v44 = vld [vmem:[%s1428_s1 + $0x10] sm:$0xff] }
  0x4f   : > { %458 = vmatpush.msra.mxu0 %v350_v44 }
  0x51   : > { %459 = vmatpush.msra.mxu0 %v349_v52 }
  0x53   : > { %460 = vmatpush.msra.mxu0 %v348_v55 }
  0x54   : > { %323 = vadd.xlane.f32.xlu0 %v322_v47 }
  0x9f   : > { %v279_v63 = vpop.xlane.xlu0 %278 }
  0xa0   : > { %v285_v8 = vpop.xlane.xlu1 %284  ;;  %v332_v33 = vmul.f32 %v1245_v17, %v279_v63 }
  0xa1   : > { %v291_v15 = vpop.xlane.xlu2 %290  ;;  %v334_v42 = vmul.f32 %v1245_v17, %v285_v8 }
  0xa2   : > { %v383_v53 = vperm.slane %v332_v33, %v1251_v25  ;;  %v336_v60 = vmul.f32 %v1245_v17, %v291_v15 }
  0xa3   : > { %v389_v56 = vperm.slane %v334_v42, %v388_v35  ;;  %v408_v42 = vadd.s32 4294967240, %v1251_v25 }
  0xa7   : > { %v282_v43 = vpop.xlane.xlu0 %281 }
  0xa8   : > { %v333_v47 = vmul.f32 %v1245_v17, %v282_v43  ;;  %v288_v49 = vpop.xlane.xlu1 %287 }
  0xa9   : > { %v294_v50 = vpop.xlane.xlu2 %293  ;;  %v335_v51 = vmul.f32 %v1245_v17, %v288_v49 }
  0xaa   : > { %v385_v54 = vperm.slane %v333_v47, %v384_v34  ;;  %v337_v63 = vmul.f32 %v1245_v17, %v294_v50  ;;  %v397_v34 = vperm.slane %v336_v60, %v396_v59  ;;  %v412_v47 = vadd.s32 4294967232, %v1251_v25 }
  0xab   : > { %v393_v58 = vperm.slane %v335_v51, %v392_v48  ;;  %v416_v51 = vadd.s32 4294967224, %v1251_v25 }
  0xac   : > { %v387_v57 = vsel %vm386_vm1, %v385_v54, %v383_v53  ;;  %v401_v35 = vperm.slane %v337_v63, %v400_v62  ;;  %v424_v62 = vadd.s32 4294967208, %v1251_v25 }
  0xad   : > { %v391_v61 = vsel %vm390_vm2, %v389_v56, %v387_v57 }
  0xae   : > { %v395_v16 = vsel %vm394_vm3, %v393_v58, %v391_v61  ;;  %v420_v58 = vadd.s32 4294967216, %v1251_v25 }
  0xaf   : > { %v297_v8 = vpop.xlane.xlu0 %296  ;;  %v399_v43 = vsel %vm398_vm4, %v397_v34, %v395_v16 }
  0xb0   : > { %v338_v24 = vmul.f32 %v1245_v17, %v297_v8  ;;  %v300_v26 = vpop.xlane.xlu1 %299  ;;  %v403_v49 = vsel %vm402_vm5, %v401_v35, %v399_v43  ;;  %v432_v35 = vadd.s32 4294967192, %v1251_v25 }
  0xb1   : > { %v303_v33 = vpop.xlane.xlu2 %302  ;;  %v339_v15 = vmul.f32 %v1245_v17, %v300_v26 }
  0xb2   : > { %v405_v44 = vperm.slane %v338_v24, %v404_v3  ;;  %v340_v48 = vmul.f32 %v1245_v17, %v303_v33  ;;  %v428_v24 = vadd.s32 4294967200, %v1251_v25 }
  0xb3   : > { %v409_v50 = vperm.slane %v339_v15, %v408_v42 }
  0xb4   : > { %v407_v52 = vsel %vm406_vm6, %v405_v44, %v403_v49  ;;  %v413_v57 = vperm.slane %v340_v48, %v412_v47  ;;  %v436_v48 = vadd.s32 4294967184, %v1251_v25 }
  0xb5   : > { %v411_v60 = vsel %vm410_vm7, %v409_v50, %v407_v52 }
  0xb6   : > { %v415_v3 = vsel %vm414_vm8, %v413_v57, %v411_v60 }
  0xb7   : > { %v306_v53 = vpop.xlane.xlu0 %305 }
  0xb8   : > { %v341_v54 = vmul.f32 %v1245_v17, %v306_v53  ;;  %v309_v55 = vpop.xlane.xlu1 %308  ;;  %v440_v53 = vadd.s32 4294967176, %v1251_v25  ;;  %v364_v25 = vld [vmem:[%s1429_s2] sm:$0x1] }
  0xb9   : > { %v312_v56 = vpop.xlane.xlu2 %311  ;;  %v342_v59 = vmul.f32 %v1245_v17, %v309_v55 }
  0xba   : > { %v417_v61 = vperm.slane %v341_v54, %v416_v51  ;;  %v343_v63 = vmul.f32 %v1245_v17, %v312_v56 }
  0xbb   : > { %v421_v8 = vperm.slane %v342_v59, %v420_v58 }
  0xbc   : > { %v419_v16 = vsel %vm418_vm9, %v417_v61, %v415_v3  ;;  %v425_v33 = vperm.slane %v343_v63, %v424_v62  ;;  %v466_v61 = vld [vmem:[%s1430_s3] sm:$0xff]  ;;  %v1304_v3 = vshrl.u32 %v381_v7, 7 }
  0xbd   : > { %v423_v43 = vsel %vm422_vm10, %v421_v8, %v419_v16  ;;  %487 = vmatpush.msra.mxu1 %v466_v61 }
  0xbe   : > { %v427_v50 = vsel %vm426_vm11, %v425_v33, %v423_v43  ;;  %830 = vset.pattern.permute.xlu1 %v1304_v3  ;;  %v526_v8 = vadd.s32 16, %v1304_v3  ;;  %v520_v16 = vadd.s32 8, %v1304_v3  ;;  %v562_v61 = vadd.s32 64, %v1304_v3 }
  0xbf   : > { %v315_v26 = vpop.xlane.xlu0 %314 }
  0xc0   : > { %v344_v34 = vmul.f32 %v1245_v17, %v315_v26  ;;  %v318_v42 = vpop.xlane.xlu1 %317  ;;  %832 = vset.pattern.permute.xlu0 %v526_v8  ;;  %831 = vset.pattern.permute.xlu2 %v520_v16  ;;  %v592_v8 = vadd.s32 104, %v1304_v3 }
  0xc1   : > { %v321_v15 = vpop.xlane.xlu2 %320  ;;  %v345_v44 = vmul.f32 %v1245_v17, %v318_v42 }
  0xc2   : > { %v429_v47 = vperm.slane %v344_v34, %v428_v24  ;;  %v346_v49 = vmul.f32 %v1245_v17, %v321_v15  ;;  %v467_v24 = vld [vmem:[%s1431_s4] sm:$0x1] }
  0xc3   : > { %v433_v51 = vperm.slane %v345_v44, %v432_v35 }
  0xc4   : > { %v431_v52 = vsel %vm430_vm12, %v429_v47, %v427_v50  ;;  %v437_v54 = vperm.slane %v346_v49, %v436_v48 }
  0xc5   : > { %v435_v57 = vsel %vm434_vm13, %v433_v51, %v431_v52 }
  0xc6   : > { %v439_v59 = vsel %vm438_vm14, %v437_v54, %v435_v57  ;;  %v568_v54 = vadd.s32 72, %v1304_v3  ;;  %v598_v57 = vadd.s32 112, %v1304_v3 }
  0xc7   : > { %v324_v55 = vpop.xlane.xlu0 %323 }
  0xc8   : > { %v347_v56 = vmul.f32 %v1245_v17, %v324_v55  ;;  %v532_v55 = vadd.s32 24, %v1304_v3 }
  0xca   : > { %v441_v58 = vperm.slane %v347_v56, %v440_v53  ;;  %v538_v56 = vadd.s32 32, %v1304_v3 }
  0xcc   : > { %v443_v60 = vsel %vm442_vm15, %v441_v58, %v439_v59  ;;  %v544_v58 = vadd.s32 40, %v1304_v3  ;;  %v550_v59 = vadd.s32 48, %v1304_v3 }
  0xcd   : > { %461 = vmatmul.f32.vlgmr.msra.gmra.mxu0 %v443_v60  ;;  %v556_v60 = vadd.s32 56, %v1304_v3 }
 0x14a   : > { %v462_v62 = vpop.f32.mrf.mxu0 }
 0x14b   : > { %v463_v63 = vadd.f32 %v462_v62, %v364_v25  ;;  %v604_v25 = vadd.s32 120, %v1304_v3  ;;  %v574_v62 = vadd.s32 80, %v1304_v3 }
 0x14d   : > { %v465_v17 = vmax.f32 %v463_v63, 0.0  ;;  %v580_v63 = vadd.s32 88, %v1304_v3 }
 0x14f   : > { %770 = vmatmul.msk.f32.vlgmr.msra.gmra.mxu1 %vm468_vm0, %v465_v17  ;;  %v586_v17 = vadd.s32 96, %v1304_v3 }
 0x1cc   : > { %v489_v26 = vpop.f32.mrf.mxu1 }
 0x1cd   : > { %v490_v33 = vadd.f32 %v489_v26, %v467_v24 }
 0x1cf   : > { %v771_v34 = vmul.f32 -1.442695, %v490_v33 }
 0x1d1   : > { %849 = vpow2.f32 %v771_v34 }
 0x1d7   : > { %v850_v35 = vpop.eup %849 }
 0x1d8   : > { %v495_v42 = vadd.f32 1.0, %v850_v35 }
 0x1da   : > { %851 = vrcp.f32 %v495_v42  ;;  %v507_v44 = vand.u32 2147483648, %v495_v42  ;;  %v505_v48 = vand.u32 2147483647, %v495_v42  ;;  %vm501_vm2 = vweird.f32 %v495_v42 }
 0x1dc   : > { %v508_v50 = vor.u32 1.1754944e-38, %v507_v44  ;;  %vm506_vm4 = vcmp.eq.f32.partialorder %v505_v48, 8.507059e+37 }
 0x1e0   : > { %v852_v7 = vpop.eup %851 }
 0x1e1   : > { %v497_v15 = vmul.f32 %v852_v7, %v495_v42  ;;  %vm502_vm1 = vweird.f32 %v852_v7 }
 0x1e2   : > { %vm503_vm3 = vmor %vm501_vm2, %vm502_vm1 }
 0x1e3   : > { %v498_v43 = vsub.f32 1.0, %v497_v15 }
 0x1e5   : > { %v499_v47 = vmul.f32 %v852_v7, %v498_v43 }
 0x1e7   : > { %v500_v49 = vadd.f32 %v852_v7, %v499_v47 }
 0x1e9   : > { %v504_v51 = vsel %vm503_vm3, %v852_v7, %v500_v49 }
 0x1ea   : > { %v509_v52 = vsel %vm506_vm4, %v508_v50, %v504_v51 }
 0x1eb   : > { %v511_v53 = vperm.slane %v509_v52, 0 }
 0x1ed   : > { %528 = vperm.xlu0 %832, %v511_v53   ;;  %522 = vperm.xlu2 %831, %v511_v53  }
 0x1ee   : > { %516 = vperm.xlu1 %830, %v511_v53  }
 0x1f5   : > { %839 = vset.pattern.permute.xlu0 %v568_v54  ;;  %833 = vset.pattern.permute.xlu2 %v532_v55 }
 0x1f6   : > { %834 = vset.pattern.permute.xlu1 %v538_v56 }
 0x1fd   : > { %570 = vperm.xlu0 %839, %v511_v53   ;;  %534 = vperm.xlu2 %833, %v511_v53  }
 0x1fe   : > { %540 = vperm.xlu1 %834, %v511_v53  }
 0x205   : > { %844 = vset.pattern.permute.xlu0 %v598_v57  ;;  %835 = vset.pattern.permute.xlu2 %v544_v58 }
 0x206   : > { %836 = vset.pattern.permute.xlu1 %v550_v59 }
 0x20d   : > { %600 = vperm.xlu0 %844, %v511_v53   ;;  %546 = vperm.xlu2 %835, %v511_v53  }
 0x20e   : > { %552 = vperm.xlu1 %836, %v511_v53  }
 0x215   : > { %837 = vset.pattern.permute.xlu2 %v556_v60  ;;  %846 = vset.pattern.permute.xlu0 %v604_v25 }
 0x216   : > { %838 = vset.pattern.permute.xlu1 %v562_v61 }
 0x21d   : > { %558 = vperm.xlu2 %837, %v511_v53  }
 0x21e   : > { %564 = vperm.xlu1 %838, %v511_v53  }
 0x225   : > { %840 = vset.pattern.permute.xlu2 %v574_v62 }
 0x226   : > { %841 = vset.pattern.permute.xlu1 %v580_v63 }
 0x22d   : > { %576 = vperm.xlu2 %840, %v511_v53  }
 0x22e   : > { %582 = vperm.xlu1 %841, %v511_v53  }
 0x235   : > { %842 = vset.pattern.permute.xlu2 %v586_v17 }
 0x236   : > { %843 = vset.pattern.permute.xlu1 %v592_v8 }
 0x23d   : > { %588 = vperm.xlu2 %842, %v511_v53  }
 0x23e   : > { %594 = vperm.xlu1 %843, %v511_v53  }
 0x245   : > { %845 = vset.pattern.permute.xlu2 %v604_v25 }
 0x247   : > { %v523_v16 = vpop.permute.xlu2 %522 }
 0x248   : > { %v610_v24 = vmul.f32 %v523_v16, %v1109_v9  ;;  %v611_v26 = vmul.f32 %v523_v16, %v1112_v10 }
 0x24a   : > { %642 = vst [vmem:[%s1329_s7 + $0x10] sm:$0xff] %v610_v24 }
 0x24b   : > { %643 = vst [vmem:[%s1329_s7 + $0x18] sm:$0xff] %v611_v26 }
 0x24d   : > { %606 = vperm.xlu2 %845, %v511_v53  }
 0x257   : > { %v535_v3 = vpop.permute.xlu2 %534 }
 0x258   : > { %v614_v33 = vmul.f32 %v535_v3, %v1115_v11  ;;  %v615_v9 = vmul.f32 %v535_v3, %v1118_v12 }
 0x25a   : > { %646 = vst [vmem:[%s1329_s7 + $0x30] sm:$0xff] %v614_v33 }
 0x25b   : > { %647 = vst [vmem:[%s1329_s7 + $0x38] sm:$0xff] %v615_v9 }
 0x25f   : > { %v529_v10 = vpop.permute.xlu0 %528 }
 0x260   : > { %v612_v34 = vmul.f32 %v529_v10, %v1091_v2  ;;  %v613_v35 = vmul.f32 %v529_v10, %v1096_v4  ;;  %v517_v42 = vpop.permute.xlu1 %516 }
 0x261   : > { %v608_v7 = vmul.f32 %v517_v42, %v1085_v0  ;;  %v609_v15 = vmul.f32 %v517_v42, %v1088_v1 }
 0x262   : > { %644 = vst [vmem:[%s1329_s7 + $0x20] sm:$0xff] %v612_v34 }
 0x263   : > { %645 = vst [vmem:[%s1329_s7 + $0x28] sm:$0xff] %v613_v35 }
 0x264   : > { %640 = vst [vmem:[%s1329_s7] sm:$0xff] %v608_v7 }
 0x265   : > { %641 = vst [vmem:[%s1329_s7 + $0x8] sm:$0xff] %v609_v15 }
 0x267   : > { %v547_v11 = vpop.permute.xlu2 %546 }
 0x268   : > { %v618_v12 = vmul.f32 %v547_v11, %v1121_v13  ;;  %v619_v2 = vmul.f32 %v547_v11, %v1124_v14 }
 0x26a   : > { %650 = vst [vmem:[%s1329_s7 + $0x50] sm:$0xff] %v618_v12 }
 0x26b   : > { %651 = vst [vmem:[%s1329_s7 + $0x58] sm:$0xff] %v619_v2 }
 0x26f   : > { %v571_v0 = vpop.permute.xlu0 %570 }
 0x270   : > { %v626_v1 = vmul.f32 %v571_v0, %v1157_v27  ;;  %v627_v4 = vmul.f32 %v571_v0, %v1160_v28  ;;  %v541_v43 = vpop.permute.xlu1 %540 }
 0x271   : > { %v616_v44 = vmul.f32 %v541_v43, %v1099_v5  ;;  %v617_v47 = vmul.f32 %v541_v43, %v1102_v6 }
 0x272   : > { %658 = vst [vmem:[%s1329_s7 + $0x90] sm:$0xff] %v626_v1 }
 0x273   : > { %659 = vst [vmem:[%s1329_s7 + $0x98] sm:$0xff] %v627_v4 }
 0x274   : > { %648 = vst [vmem:[%s1329_s7 + $0x40] sm:$0xff] %v616_v44 }
 0x275   : > { %649 = vst [vmem:[%s1329_s7 + $0x48] sm:$0xff] %v617_v47 }
 0x277   : > { %v559_v13 = vpop.permute.xlu2 %558 }
 0x278   : > { %v622_v14 = vmul.f32 %v559_v13, %v1139_v20  ;;  %v623_v27 = vmul.f32 %v559_v13, %v1142_v21 }
 0x27a   : > { %654 = vst [vmem:[%s1329_s7 + $0x70] sm:$0xff] %v622_v14 }
 0x27b   : > { %655 = vst [vmem:[%s1329_s7 + $0x78] sm:$0xff] %v623_v27 }
 0x27f   : > { %v601_v5 = vpop.permute.xlu0 %600 }
 0x280   : > { %v636_v6 = vmul.f32 %v601_v5, %v1193_v40  ;;  %v637_v28 = vmul.f32 %v601_v5, %v1196_v41  ;;  %v553_v48 = vpop.permute.xlu1 %552 }
 0x281   : > { %v620_v49 = vmul.f32 %v553_v48, %v1133_v18  ;;  %v621_v50 = vmul.f32 %v553_v48, %v1136_v19 }
 0x282   : > { %668 = vst [vmem:[%s1329_s7 + $0xe0] sm:$0xff] %v636_v6 }
 0x283   : > { %669 = vst [vmem:[%s1329_s7 + $0xe8] sm:$0xff] %v637_v28 }
 0x284   : > { %652 = vst [vmem:[%s1329_s7 + $0x60] sm:$0xff] %v620_v49 }
 0x285   : > { %653 = vst [vmem:[%s1329_s7 + $0x68] sm:$0xff] %v621_v50 }
 0x287   : > { %v577_v20 = vpop.permute.xlu2 %576 }
 0x288   : > { %v628_v21 = vmul.f32 %v577_v20, %v1163_v29  ;;  %v629_v40 = vmul.f32 %v577_v20, %v1166_v30 }
 0x28a   : > { %660 = vst [vmem:[%s1329_s7 + $0xa0] sm:$0xff] %v628_v21 }
 0x28b   : > { %661 = vst [vmem:[%s1329_s7 + $0xa8] sm:$0xff] %v629_v40 }
 0x290   : > { %v565_v41 = vpop.permute.xlu1 %564 }
 0x291   : > { %v624_v18 = vmul.f32 %v565_v41, %v1145_v22  ;;  %v625_v19 = vmul.f32 %v565_v41, %v1148_v23 }
 0x293   : > { %656 = vst [vmem:[%s1329_s7 + $0x80] sm:$0xff] %v624_v18 }
 0x294   : > { %657 = vst [vmem:[%s1329_s7 + $0x88] sm:$0xff] %v625_v19 }
 0x297   : > { %v589_v51 = vpop.permute.xlu2 %588 }
 0x298   : > { %v632_v52 = vmul.f32 %v589_v51, %v1181_v36  ;;  %v633_v29 = vmul.f32 %v589_v51, %v1184_v37 }
 0x29a   : > { %664 = vst [vmem:[%s1329_s7 + $0xc0] sm:$0xff] %v632_v52 }
 0x29b   : > { %665 = vst [vmem:[%s1329_s7 + $0xc8] sm:$0xff] %v633_v29 }
 0x2a0   : > { %v583_v30 = vpop.permute.xlu1 %582 }
 0x2a1   : > { %v630_v53 = vmul.f32 %v583_v30, %v1169_v31  ;;  %v631_v22 = vmul.f32 %v583_v30, %v1172_v32 }
 0x2a3   : > { %662 = vst [vmem:[%s1329_s7 + $0xb0] sm:$0xff] %v630_v53 }
 0x2a4   : > { %663 = vst [vmem:[%s1329_s7 + $0xb8] sm:$0xff] %v631_v22 }
 0x2a7   : > { %v607_v23 = vpop.permute.xlu2 %606 }
 0x2a8   : > { %v638_v54 = vmul.f32 %v607_v23, %v1205_v45  ;;  %v639_v36 = vmul.f32 %v607_v23, %v1208_v46 }
 0x2aa   : > { %670 = vst [vmem:[%s1329_s7 + $0xf0] sm:$0xff] %v638_v54 }
 0x2ab   : > { %671 = vst [vmem:[%s1329_s7 + $0xf8] sm:$0xff] %v639_v36 }
 0x2b0   : > { %v595_v31 = vpop.permute.xlu1 %594 }
 0x2b1   : > { %v634_v32 = vmul.f32 %v595_v31, %v1187_v38  ;;  %v635_v37 = vmul.f32 %v595_v31, %v1190_v39 }
 0x2b3   : > { %666 = vst [vmem:[%s1329_s7 + $0xd0] sm:$0xff] %v634_v32 }
 0x2b4   : > { %667 = vst [vmem:[%s1329_s7 + $0xd8] sm:$0xff] %v635_v37 }
 0x2b5   : > { %910 = shalt.err (!%p907_p4)
}
 0x2b6   : > { %s954_s12 = smov 256   ;;  %s955_s10 = smov 16  }
 0x2b7   : > { %781 = dma.vmem_to_hbm [thread:$0]  (%p1036_p11), %s686_s29, 4096, %s688_s13, %s673_s15, %s954_s12, %s954_s12, %s955_s10  }
 0x2b8 PF: > { %s702_s7 = sand.u32 1, %s937_s18   ;;  %p1438_p7 = scmp.ge.s32.totalorder %s949_s21, 2 }
 0x2b9   : > { %s703_s14 = scalar_lea.sflag [#allocation4], %s702_s7 }
 0x2ba   : > { %p788_p5 = pnand %p1438_p7, %p1040_p12 }
 0x2bc   : > { %p789_p8 = pneg %p788_p5 }
 0x2be   : > { %932 = dma.done.wait (%p789_p8), %s703_s14, 4096  }
 0x2bf   : > { %934 = vsyncadd (%p789_p8), %s703_s14, 4294963200  ;;  %p18_p10 = scmp.ge.s32.totalorder %s1011_s24, 4   ;;  %s1439_s18 = smov %s941_s19 }
 0x2c0   : > { %s1440_s19 = smov %s945_s20  ;;  %s1441_s20 = smov %s1023_s27 }
 0x2c1   : > { %s1442_s21 = smov %s1011_s24  ;;  %20 = sbr.rel (!%p18_p10) target bundleno = 5 (0x5), region = 85 }
 0x2c6   :  { %709 = vsyncpa [#allocation3], 1 }
 0x2c7   :  { %711 = vsyncpa [#allocation3 + $0x1], 1 }
 0x2c8   :  { %712 = vsyncpa [#allocation4], 1 }
 0x2c9   :  { %714 = vsyncpa [#allocation4 + $0x1], 1 }

</bundles_post_ra>
